<compile_context>
chip_gen: v7x
topology: tpu7x:2x2x1
jax: 0.10.0
libtpu: 0.0.40
codegen_flags: <defaults>
</compile_context>

<pallas_src>
import functools

import jax
import jax.numpy as jnp
from jax import lax
from jax.experimental import pallas as pl
from jax.experimental.pallas import tpu as pltpu

LANE = 128


def _round_up(x, m):
    return (x + m - 1) // m * m


# -----------------------------------------------------------------------------
# Kernel: one (image, row-strip) per grid step.
# -----------------------------------------------------------------------------
def _basic_block_kernel(xc_ref, xt_ref, xb_ref, w1_ref, b1_ref, w2_ref, b2_ref,
                        out_ref, halo_ref, *, Ht, W):
    """
    xc_ref  : (1, Ht, W, Cinp) f32   input strip (lane-padded NHWC)
    xt_ref  : (1, 1, W, Cinp)  f32   row just above the strip (ignored if s==0)
    xb_ref  : (1, 1, W, Cinp)  f32   row just below the strip (ignored if last)
    w1_ref  : (Cinp, C0p)      bf16  1x1 conv weight, BN1 scale folded in
    b1_ref  : (1, C0p)         f32   folded BN1 bias
    w2_ref  : (9, C0p, C1p)    bf16  3x3 conv weight (tap-major), BN2 folded in
    b2_ref  : (1, C1p)         f32   folded BN2 bias
    out_ref : (1, Ht, W, C1p)  f32
    halo_ref: (Ht+2, W+2, C0p) bf16  scratch: conv1 activation + 1px zero halo
    """
    s = pl.program_id(1)
    n_strips = pl.num_programs(1)
    Cinp = xc_ref.shape[-1]
    C0p = halo_ref.shape[-1]
    C1p = out_ref.shape[-1]
    HW = Ht * W

    w1 = w1_ref[...]
    b1 = b1_ref[...]

    def conv1(x2d):  # (rows, Cinp) f32 -> (rows, C0p) f32
        h = jnp.dot(x2d.astype(jnp.bfloat16), w1,
                    preferred_element_type=jnp.float32)
        h = h + b1
        return jnp.maximum(h, 0.1 * h)          # LeakyReLU(0.1)

    # Left/right zero-padding columns.  Written every step (cheap: 2 columns)
    # so the kernel has no cross-iteration scratch state -> both grid axes can
    # be "parallel" (per-core scratch would defeat a once-only init).
    zcol = jnp.zeros((Ht + 2, 1, C0p), jnp.bfloat16)
    halo_ref[pl.ds(0, Ht + 2), pl.ds(0, 1), :] = zcol
    halo_ref[pl.ds(0, Ht + 2), pl.ds(W + 1, 1), :] = zcol

    # conv1 + BN1 + LeakyReLU for the strip interior ...
    x2d = xc_ref[...].reshape(HW, Cinp)          # f32, reused for the residual
    h_c = conv1(x2d)
    halo_ref[pl.ds(1, Ht), pl.ds(1, W), :] = (
        h_c.reshape(Ht, W, C0p).astype(jnp.bfloat16))

    # ... and for the two neighbour rows that form the strip's top/bottom halo.
    h_t = conv1(xt_ref[...].reshape(W, Cinp))
    halo_ref[pl.ds(0, 1), pl.ds(1, W), :] = (
        h_t.reshape(1, W, C0p).astype(jnp.bfloat16))
    h_b = conv1(xb_ref[...].reshape(W, Cinp))
    halo_ref[pl.ds(Ht + 1, 1), pl.ds(1, W), :] = (
        h_b.reshape(1, W, C0p).astype(jnp.bfloat16))

    # At the true image borders the 3x3 zero padding applies to the conv1
    # OUTPUT -> overwrite those halo rows with zeros on the first/last strip.
    zrow = jnp.zeros((1, W, C0p), jnp.bfloat16)

    @pl.when(s == 0)
    def _():
        halo_ref[pl.ds(0, 1), pl.ds(1, W), :] = zrow

    @pl.when(s == n_strips - 1)
    def _():
        halo_ref[pl.ds(Ht + 1, 1), pl.ds(1, W), :] = zrow

    # conv2 (3x3, pad=1) as 9 accumulated tap matmuls (no im2col slab).
    # NOTE(v6e/v7x): with C0p == 128 each tap only half-fills the 256-wide MXU;
    # at real Darknet widths (>=256 channels) the contraction fills it.
    o = None
    for t in range(9):
        ky, kx = divmod(t, 3)
        tap = halo_ref[pl.ds(ky, Ht), pl.ds(kx, W), :]        # (Ht, W, C0p) bf16
        d = jnp.dot(tap.reshape(HW, C0p), w2_ref[t],
                    preferred_element_type=jnp.float32)
        o = d if o is None else o + d
    o = o + b2_ref[...]
    o = jnp.maximum(o, 0.1 * o)                                # LeakyReLU(0.1)

    # Residual add in f32 (requires cfg[1] == inchannel, i.e. C1p == Cinp).
    out = o + x2d
    out_ref[...] = out.reshape(1, Ht, W, C1p).astype(out_ref.dtype)


# -----------------------------------------------------------------------------
# Parameter packing & layout helpers (do these once at the network boundary).
# -----------------------------------------------------------------------------
def pack_params(w1_oihw, g1, be1, m1, v1, w2_oihw, g2, be2, m2, v2, *, eps=1e-5):
    """Fold eval-mode BN into the conv weights, pad channels to 128 lanes,
    and cast matmul operands to bf16 (biases stay f32)."""
    C0, Cin = w1_oihw.shape[0], w1_oihw.shape[1]
    C1 = w2_oihw.shape[0]
    Cinp, C0p, C1p = (_round_up(c, LANE) for c in (Cin, C0, C1))

    s1 = g1 / jnp.sqrt(v1 + eps)
    b1 = be1 - m1 * s1
    s2 = g2 / jnp.sqrt(v2 + eps)
    b2 = be2 - m2 * s2

    w1_mat = jnp.transpose(w1_oihw[:, :, 0, 0]) * s1[None, :]             # (Cin, C0)
    w2_t = jnp.transpose(w2_oihw, (2, 3, 1, 0)) * s2[None, None, None, :]  # (3,3,C0,C1)

    w1_p = jnp.zeros((Cinp, C0p), jnp.float32).at[:Cin, :C0].set(w1_mat)
    w2_p = (jnp.zeros((3, 3, C0p, C1p), jnp.float32)
            .at[:, :, :C0, :C1].set(w2_t)).reshape(9, C0p, C1p)
    b1_p = jnp.zeros((1, C0p), jnp.float32).at[0, :C0].set(b1)
    b2_p = jnp.zeros((1, C1p), jnp.float32).at[0, :C1].set(b2)

    return dict(w1=w1_p.astype(jnp.bfloat16), b1=b1_p,
                w2=w2_p.astype(jnp.bfloat16), b2=b2_p,
                cin=Cin, c0=C0, c1=C1)


def to_network_layout(x_nchw):
    """NCHW -> lane-padded NHWC.  Done once at the network boundary."""
    N, C, H, W = x_nchw.shape
    Cp = _round_up(C, LANE)
    x = jnp.transpose(x_nchw, (0, 2, 3, 1))
    return jnp.zeros((N, H, W, Cp), x_nchw.dtype).at[..., :C].set(x)


def from_network_layout(x_nhwc_p, C):
    """Lane-padded NHWC -> NCHW (once at the network boundary)."""
    return jnp.transpose(x_nhwc_p[..., :C], (0, 3, 1, 2))


def _vmem_bytes_estimate(Ht, W, Cinp, C0p, C1p):
    f32, bf = 4, 2
    act = Ht * W
    v = 2 * act * Cinp * f32                              # x strip, double-buffered
    v += 2 * 2 * 2 * W * Cinp * f32                       # top/bottom halo rows
    v += 2 * act * C1p * f32                              # output strip, double-buffered
    v += Cinp * C0p * bf + 9 * C0p * C1p * bf + (C0p + C1p) * f32   # weights (single-buffered)
    v += (Ht + 2) * _round_up(W + 2, 8) * C0p * bf        # halo scratch
    v += 2 * act * (C0p * (f32 + bf) + C1p * f32 + Cinp * f32)      # in-flight values
    return v


def _choose_tile_rows(H, W, Cinp, C0p, C1p, budget_bytes=40 << 20):
    # Largest divisor of H whose per-strip VMEM footprint fits the budget
    # (budget sized against v7x's 64 MiB VMEM with headroom).
    for ht in sorted((d for d in range(1, H + 1) if H % d == 0), reverse=True):
        if _vmem_bytes_estimate(ht, W, Cinp, C0p, C1p) <= budget_bytes:
            return ht
    return 1


# -----------------------------------------------------------------------------
# Block application on network-layout activations.
# -----------------------------------------------------------------------------
def basic_block_apply(x_p, params, *, tile_rows=None):
    """x_p: (N, H, W, Cinp) lane-padded NHWC f32.  Returns the same layout."""
    N, H, W, Cinp = x_p.shape
    C0p = params["w1"].shape[1]
    C1p = params["w2"].shape[2]
    assert C1p == Cinp, "residual add requires cfg[1] == inchannel"

    Ht = tile_rows if tile_rows is not None else _choose_tile_rows(
        H, W, Cinp, C0p, C1p)
    assert H % Ht == 0, "tile_rows must divide H"
    S = H // Ht

    est = _vmem_bytes_estimate(Ht, W, Cinp, C0p, C1p)
    vmem_limit = int(min(48 << 20, max(32 << 20, 2 * est)))

    # Rows just above / below each strip (tiny: 2 rows per strip).  The first
    # top row / last bottom row are dummies; the kernel zeroes those halo rows.
    zrow = jnp.zeros((N, 1, W, Cinp), x_p.dtype)
    if S > 1:
        x_top = jnp.concatenate([zrow, x_p[:, Ht - 1:H - 1:Ht]], axis=1)
        x_bot = jnp.concatenate([x_p[:, Ht:H:Ht], zrow], axis=1)
    else:
        x_top = zrow
        x_bot = zrow

    kernel = functools.partial(_basic_block_kernel, Ht=Ht, W=W)
    return pl.pallas_call(
        kernel,
        out_shape=jax.ShapeDtypeStruct((N, H, W, C1p), x_p.dtype),
        grid=(N, S),
        in_specs=[
            pl.BlockSpec((1, Ht, W, Cinp), lambda n, s: (n, s, 0, 0)),
            pl.BlockSpec((1, 1, W, Cinp), lambda n, s: (n, s, 0, 0)),
            pl.BlockSpec((1, 1, W, Cinp), lambda n, s: (n, s, 0, 0)),
            pl.BlockSpec((Cinp, C0p), lambda n, s: (0, 0),
                         pipeline_mode=pl.Buffered(1)),
            pl.BlockSpec((1, C0p), lambda n, s: (0, 0),
                         pipeline_mode=pl.Buffered(1)),
            pl.BlockSpec((9, C0p, C1p), lambda n, s: (0, 0, 0),
                         pipeline_mode=pl.Buffered(1)),
            pl.BlockSpec((1, C1p), lambda n, s: (0, 0),
                         pipeline_mode=pl.Buffered(1)),
        ],
        out_specs=pl.BlockSpec((1, Ht, W, C1p), lambda n, s: (n, s, 0, 0)),
        scratch_shapes=[pltpu.VMEM((Ht + 2, W + 2, C0p), jnp.bfloat16)],
        compiler_params=pltpu.CompilerParams(
            dimension_semantics=("parallel", "parallel"),
            vmem_limit_bytes=vmem_limit),
    )(x_p, x_top, x_bot, params["w1"], params["b1"], params["w2"], params["b2"])


def basic_block_forward(x_nchw, w1_oihw, g1, be1, m1, v1,
                        w2_oihw, g2, be2, m2, v2, *, eps=1e-5, tile_rows=None):
    """Drop-in (NCHW in / NCHW out) wrapper.  A full network should instead
    call to_network_layout / pack_params once and chain basic_block_apply."""
    params = pack_params(w1_oihw, g1, be1, m1, v1,
                         w2_oihw, g2, be2, m2, v2, eps=eps)
    x_p = to_network_layout(x_nchw)
    out_p = basic_block_apply(x_p, params, tile_rows=tile_rows)
    return from_network_layout(out_p, params["c1"])


# -----------------------------------------------------------------------------
# Pure-JAX (XLA) reference matching the PyTorch module in eval mode.
# -----------------------------------------------------------------------------
def reference_forward(x, w1_oihw, g1, be1, m1, v1, w2_oihw, g2, be2, m2, v2,
                      eps=1e-5):
    dn = ("NCHW", "OIHW", "NCHW")

    def bn(h, g, be, m, v):
        return ((h - m[None, :, None, None]) /
                jnp.sqrt(v[None, :, None, None] + eps) *
                g[None, :, None, None] + be[None, :, None, None])

    def lrelu(h):
        return jnp.where(h > 0, h, 0.1 * h)

    h = lax.conv_general_dilated(x, w1_oihw, (1, 1), "VALID",
                                 dimension_numbers=dn)
    h = lrelu(bn(h, g1, be1, m1, v1))
    h = lax.conv_general_dilated(h, w2_oihw, (1, 1), ((1, 1), (1, 1)),
                                 dimension_numbers=dn)
    h = lrelu(bn(h, g2, be2, m2, v2))
    return h + x


if __name__ == "__main__":
    # Small shapes consistent with the module: inchannel=4, cfg=[8, 4].
    N, Cin, H, W = 2, 4, 16, 16
    C0, C1 = 8, 4          # cfg[0], cfg[1]; cfg[1] == inchannel for the residual
    eps = 1e-5

    key = jax.random.PRNGKey(0)
    ks = jax.random.split(key, 11)

    w1_oihw = 0.1 * jax.random.normal(ks[0], (C0, Cin, 1, 1), jnp.float32)
    g1 = 0.5 + jax.random.uniform(ks[1], (C0,), jnp.float32)
    be1 = 0.1 * jax.random.normal(ks[2], (C0,), jnp.float32)
    m1 = 0.1 * jax.random.normal(ks[3], (C0,), jnp.float32)
    v1 = 0.5 + jax.random.uniform(ks[4], (C0,), jnp.float32)

    w2_oihw = 0.1 * jax.random.normal(ks[5], (C1, C0, 3, 3), jnp.float32)
    g2 = 0.5 + jax.random.uniform(ks[6], (C1,), jnp.float32)
    be2 = 0.1 * jax.random.normal(ks[7], (C1,), jnp.float32)
    m2 = 0.1 * jax.random.normal(ks[8], (C1,), jnp.float32)
    v2 = 0.5 + jax.random.uniform(ks[9], (C1,), jnp.float32)

    x = jax.random.normal(ks[10], (N, Cin, H, W), jnp.float32)

    # tile_rows=4 forces 4 row-strips at this small size so the strip/halo
    # path (first / middle / last strip) is exercised in the demo.
    out = basic_block_forward(x, w1_oihw, g1, be1, m1, v1,
                              w2_oihw, g2, be2, m2, v2, eps=eps, tile_rows=4)
    out = jax.block_until_ready(out)

    ref = reference_forward(x, w1_oihw, g1, be1, m1, v1,
                            w2_oihw, g2, be2, m2, v2, eps=eps)
    ref = jax.block_until_ready(ref)

    assert out.shape == (N, C1, H, W)
    # bf16 matmul operands (f32 accumulation / bias / residual) -> loosened tol.
    assert jnp.allclose(out, ref, rtol=3e-2, atol=3e-2), (
        f"max abs err = {jnp.max(jnp.abs(out - ref))}")
    print("KERNEL_OK")
</pallas_src>

<mosaic_0001>
module attributes {stable_mosaic.version = 11 : i64} {
  func.func @_basic_block_kernel(%arg0: i32, %arg1: i32, %arg2: memref<1x4x16x128xf32, #tpu.memory_space<vmem>>, %arg3: memref<1x1x16x128xf32, #tpu.memory_space<vmem>>, %arg4: memref<1x1x16x128xf32, #tpu.memory_space<vmem>>, %arg5: memref<128x128xbf16, #tpu.memory_space<vmem>>, %arg6: memref<1x128xf32, #tpu.memory_space<vmem>>, %arg7: memref<9x128x128xbf16, #tpu.memory_space<vmem>>, %arg8: memref<1x128xf32, #tpu.memory_space<vmem>>, %arg9: memref<1x4x16x128xf32, #tpu.memory_space<vmem>>, %arg10: memref<6x18x128xbf16, #tpu.memory_space<vmem>>) attributes {dimension_semantics = [#tpu.dimension_semantics<parallel>, #tpu.dimension_semantics<parallel>], iteration_bounds = array<i64: 2, 4>, scalar_prefetch = 0 : i64, scratch_operands = 1 : i64, tpu.core_type = #tpu.core_type<tc>, window_params = [{transform_indices = @transform_0, window_bounds = array<i64: 1, 4, 16, 128>}, {transform_indices = @transform_1, window_bounds = array<i64: 1, 1, 16, 128>}, {transform_indices = @transform_2, window_bounds = array<i64: 1, 1, 16, 128>}, {pipeline_mode = #tpu.pipeline_mode<synchronous>, transform_indices = @transform_3, window_bounds = array<i64: 128, 128>}, {pipeline_mode = #tpu.pipeline_mode<synchronous>, transform_indices = @transform_4, window_bounds = array<i64: 1, 128>}, {pipeline_mode = #tpu.pipeline_mode<synchronous>, transform_indices = @transform_5, window_bounds = array<i64: 9, 128, 128>}, {pipeline_mode = #tpu.pipeline_mode<synchronous>, transform_indices = @transform_6, window_bounds = array<i64: 1, 128>}, {transform_indices = @transform_7, window_bounds = array<i64: 1, 4, 16, 128>}]} {
    %c0 = arith.constant 0 : index
    %c0_0 = arith.constant 0 : index
    %0 = vector.load %arg5[%c0, %c0_0] : memref<128x128xbf16, #tpu.memory_space<vmem>>, vector<128x128xbf16>
    %c0_1 = arith.constant 0 : index
    %c0_2 = arith.constant 0 : index
    %1 = vector.load %arg6[%c0_1, %c0_2] : memref<1x128xf32, #tpu.memory_space<vmem>>, vector<1x128xf32>
    %cst = arith.constant 0.000000e+00 : bf16
    %2 = vector.broadcast %cst : bf16 to vector<6x1x128xbf16>
    %c0_3 = arith.constant 0 : index
    %c0_4 = arith.constant 0 : index
    %c0_5 = arith.constant 0 : index
    %3 = vector.load %arg10[%c0_3, %c0_4, %c0_5] : memref<6x18x128xbf16, #tpu.memory_space<vmem>>, vector<6x1x128xbf16>
    tpu.vector_store %arg10[%c0_3, %c0_4, %c0_5], %2 {strides = array<i32>} : memref<6x18x128xbf16, #tpu.memory_space<vmem>>, vector<6x1x128xbf16>,
    %c0_6 = arith.constant 0 : index
    %c17 = arith.constant 17 : index
    %c0_7 = arith.constant 0 : index
    %4 = vector.load %arg10[%c0_6, %c17, %c0_7] : memref<6x18x128xbf16, #tpu.memory_space<vmem>>, vector<6x1x128xbf16>
    tpu.vector_store %arg10[%c0_6, %c17, %c0_7], %2 {strides = array<i32>} : memref<6x18x128xbf16, #tpu.memory_space<vmem>>, vector<6x1x128xbf16>,
    %c0_8 = arith.constant 0 : index
    %c0_9 = arith.constant 0 : index
    %c0_10 = arith.constant 0 : index
    %c0_11 = arith.constant 0 : index
    %5 = vector.load %arg2[%c0_8, %c0_9, %c0_10, %c0_11] : memref<1x4x16x128xf32, #tpu.memory_space<vmem>>, vector<1x4x16x128xf32>
    %6 = vector.shape_cast %5 : vector<1x4x16x128xf32> to vector<64x128xf32>
    %7 = arith.truncf %6 : vector<64x128xf32> to vector<64x128xbf16>
    %cst_12 = arith.constant dense<0.000000e+00> : vector<64x128xf32>
    %8 = tpu.matmul %7, %0, %cst_12 {dimension_numbers = #tpu.dot_dimension_numbers<[1], [0], [0], [1], [0, 0, 1, 1], [], []>} : vector<64x128xbf16>, vector<128x128xbf16>, vector<64x128xf32> -> vector<64x128xf32>
    %9 = vector.broadcast %1 : vector<1x128xf32> to vector<64x128xf32>
    %10 = arith.addf %8, %9 : vector<64x128xf32>
    %cst_13 = arith.constant 1.000000e-01 : f32
    %11 = vector.broadcast %cst_13 : f32 to vector<64x128xf32>
    %12 = arith.mulf %11, %10 : vector<64x128xf32>
    %13 = arith.maximumf %10, %12 : vector<64x128xf32>
    %14 = vector.shape_cast %13 : vector<64x128xf32> to vector<4x16x128xf32>
    %15 = arith.truncf %14 : vector<4x16x128xf32> to vector<4x16x128xbf16>
    %c1 = arith.constant 1 : index
    %c1_14 = arith.constant 1 : index
    %c0_15 = arith.constant 0 : index
    %16 = vector.load %arg10[%c1, %c1_14, %c0_15] : memref<6x18x128xbf16, #tpu.memory_space<vmem>>, vector<4x16x128xbf16>
    tpu.vector_store %arg10[%c1, %c1_14, %c0_15], %15 {strides = array<i32>} : memref<6x18x128xbf16, #tpu.memory_space<vmem>>, vector<4x16x128xbf16>,
    %c0_16 = arith.constant 0 : index
    %c0_17 = arith.constant 0 : index
    %c0_18 = arith.constant 0 : index
    %c0_19 = arith.constant 0 : index
    %17 = vector.load %arg3[%c0_16, %c0_17, %c0_18, %c0_19] : memref<1x1x16x128xf32, #tpu.memory_space<vmem>>, vector<1x1x16x128xf32>
    %18 = vector.shape_cast %17 : vector<1x1x16x128xf32> to vector<16x128xf32>
    %19 = arith.truncf %18 : vector<16x128xf32> to vector<16x128xbf16>
    %cst_20 = arith.constant dense<0.000000e+00> : vector<16x128xf32>
    %20 = tpu.matmul %19, %0, %cst_20 {dimension_numbers = #tpu.dot_dimension_numbers<[1], [0], [0], [1], [0, 0, 1, 1], [], []>} : vector<16x128xbf16>, vector<128x128xbf16>, vector<16x128xf32> -> vector<16x128xf32>
    %21 = vector.broadcast %1 : vector<1x128xf32> to vector<16x128xf32>
    %22 = arith.addf %20, %21 : vector<16x128xf32>
    %cst_21 = arith.constant 1.000000e-01 : f32
    %23 = vector.broadcast %cst_21 : f32 to vector<16x128xf32>
    %24 = arith.mulf %23, %22 : vector<16x128xf32>
    %25 = arith.maximumf %22, %24 : vector<16x128xf32>
    %26 = vector.shape_cast %25 : vector<16x128xf32> to vector<1x16x128xf32>
    %27 = arith.truncf %26 : vector<1x16x128xf32> to vector<1x16x128xbf16>
    %c0_22 = arith.constant 0 : index
    %c1_23 = arith.constant 1 : index
    %c0_24 = arith.constant 0 : index
    %28 = vector.load %arg10[%c0_22, %c1_23, %c0_24] : memref<6x18x128xbf16, #tpu.memory_space<vmem>>, vector<1x16x128xbf16>
    tpu.vector_store %arg10[%c0_22, %c1_23, %c0_24], %27 {strides = array<i32>} : memref<6x18x128xbf16, #tpu.memory_space<vmem>>, vector<1x16x128xbf16>,
    %c0_25 = arith.constant 0 : index
    %c0_26 = arith.constant 0 : index
    %c0_27 = arith.constant 0 : index
    %c0_28 = arith.constant 0 : index
    %29 = vector.load %arg4[%c0_25, %c0_26, %c0_27, %c0_28] : memref<1x1x16x128xf32, #tpu.memory_space<vmem>>, vector<1x1x16x128xf32>
    %30 = vector.shape_cast %29 : vector<1x1x16x128xf32> to vector<16x128xf32>
    %31 = arith.truncf %30 : vector<16x128xf32> to vector<16x128xbf16>
    %cst_29 = arith.constant dense<0.000000e+00> : vector<16x128xf32>
    %32 = tpu.matmul %31, %0, %cst_29 {dimension_numbers = #tpu.dot_dimension_numbers<[1], [0], [0], [1], [0, 0, 1, 1], [], []>} : vector<16x128xbf16>, vector<128x128xbf16>, vector<16x128xf32> -> vector<16x128xf32>
    %33 = vector.broadcast %1 : vector<1x128xf32> to vector<16x128xf32>
    %34 = arith.addf %32, %33 : vector<16x128xf32>
    %cst_30 = arith.constant 1.000000e-01 : f32
    %35 = vector.broadcast %cst_30 : f32 to vector<16x128xf32>
    %36 = arith.mulf %35, %34 : vector<16x128xf32>
    %37 = arith.maximumf %34, %36 : vector<16x128xf32>
    %38 = vector.shape_cast %37 : vector<16x128xf32> to vector<1x16x128xf32>
    %39 = arith.truncf %38 : vector<1x16x128xf32> to vector<1x16x128xbf16>
    %c5 = arith.constant 5 : index
    %c1_31 = arith.constant 1 : index
    %c0_32 = arith.constant 0 : index
    %40 = vector.load %arg10[%c5, %c1_31, %c0_32] : memref<6x18x128xbf16, #tpu.memory_space<vmem>>, vector<1x16x128xbf16>
    tpu.vector_store %arg10[%c5, %c1_31, %c0_32], %39 {strides = array<i32>} : memref<6x18x128xbf16, #tpu.memory_space<vmem>>, vector<1x16x128xbf16>,
    %cst_33 = arith.constant 0.000000e+00 : bf16
    %41 = vector.broadcast %cst_33 : bf16 to vector<1x16x128xbf16>
    %c0_i32 = arith.constant 0 : i32
    %42 = arith.cmpi eq, %arg1, %c0_i32 : i32
    %43 = arith.extui %42 : i1 to i32
    %c0_i32_34 = arith.constant 0 : i32
    %44 = arith.cmpi ne, %43, %c0_i32_34 : i32
    scf.if %44 {
      %c0_100 = arith.constant 0 : index
      %c1_101 = arith.constant 1 : index
      %c0_102 = arith.constant 0 : index
      %110 = vector.load %arg10[%c0_100, %c1_101, %c0_102] : memref<6x18x128xbf16, #tpu.memory_space<vmem>>, vector<1x16x128xbf16>
      tpu.vector_store %arg10[%c0_100, %c1_101, %c0_102], %41 {strides = array<i32>} : memref<6x18x128xbf16, #tpu.memory_space<vmem>>, vector<1x16x128xbf16>,
    } else {
    }
    %c3_i32 = arith.constant 3 : i32
    %45 = arith.cmpi eq, %arg1, %c3_i32 : i32
    %46 = arith.extui %45 : i1 to i32
    %c0_i32_35 = arith.constant 0 : i32
    %47 = arith.cmpi ne, %46, %c0_i32_35 : i32
    scf.if %47 {
      %c5_100 = arith.constant 5 : index
      %c1_101 = arith.constant 1 : index
      %c0_102 = arith.constant 0 : index
      %110 = vector.load %arg10[%c5_100, %c1_101, %c0_102] : memref<6x18x128xbf16, #tpu.memory_space<vmem>>, vector<1x16x128xbf16>
      tpu.vector_store %arg10[%c5_100, %c1_101, %c0_102], %41 {strides = array<i32>} : memref<6x18x128xbf16, #tpu.memory_space<vmem>>, vector<1x16x128xbf16>,
    } else {
    }
    %c0_36 = arith.constant 0 : index
    %c0_37 = arith.constant 0 : index
    %c0_38 = arith.constant 0 : index
    %48 = vector.load %arg10[%c0_36, %c0_37, %c0_38] : memref<6x18x128xbf16, #tpu.memory_space<vmem>>, vector<4x16x128xbf16>
    %49 = vector.shape_cast %48 : vector<4x16x128xbf16> to vector<64x128xbf16>
    %c0_39 = arith.constant 0 : index
    %c0_40 = arith.constant 0 : index
    %c0_41 = arith.constant 0 : index
    %50 = vector.load %arg7[%c0_39, %c0_40, %c0_41] : memref<9x128x128xbf16, #tpu.memory_space<vmem>>, vector<1x128x128xbf16>
    %51 = vector.shape_cast %50 : vector<1x128x128xbf16> to vector<128x128xbf16>
    %cst_42 = arith.constant dense<0.000000e+00> : vector<64x128xf32>
    %52 = tpu.matmul %49, %51, %cst_42 {dimension_numbers = #tpu.dot_dimension_numbers<[1], [0], [0], [1], [0, 0, 1, 1], [], []>} : vector<64x128xbf16>, vector<128x128xbf16>, vector<64x128xf32> -> vector<64x128xf32>
    %c0_43 = arith.constant 0 : index
    %c1_44 = arith.constant 1 : index
    %c0_45 = arith.constant 0 : index
    %53 = vector.load %arg10[%c0_43, %c1_44, %c0_45] : memref<6x18x128xbf16, #tpu.memory_space<vmem>>, vector<4x16x128xbf16>
    %54 = vector.shape_cast %53 : vector<4x16x128xbf16> to vector<64x128xbf16>
    %c1_46 = arith.constant 1 : index
    %c0_47 = arith.constant 0 : index
    %c0_48 = arith.constant 0 : index
    %55 = vector.load %arg7[%c1_46, %c0_47, %c0_48] : memref<9x128x128xbf16, #tpu.memory_space<vmem>>, vector<1x128x128xbf16>
    %56 = vector.shape_cast %55 : vector<1x128x128xbf16> to vector<128x128xbf16>
    %cst_49 = arith.constant dense<0.000000e+00> : vector<64x128xf32>
    %57 = tpu.matmul %54, %56, %cst_49 {dimension_numbers = #tpu.dot_dimension_numbers<[1], [0], [0], [1], [0, 0, 1, 1], [], []>} : vector<64x128xbf16>, vector<128x128xbf16>, vector<64x128xf32> -> vector<64x128xf32>
    %58 = arith.addf %52, %57 : vector<64x128xf32>
    %c0_50 = arith.constant 0 : index
    %c2 = arith.constant 2 : index
    %c0_51 = arith.constant 0 : index
    %59 = vector.load %arg10[%c0_50, %c2, %c0_51] : memref<6x18x128xbf16, #tpu.memory_space<vmem>>, vector<4x16x128xbf16>
    %60 = vector.shape_cast %59 : vector<4x16x128xbf16> to vector<64x128xbf16>
    %c2_52 = arith.constant 2 : index
    %c0_53 = arith.constant 0 : index
    %c0_54 = arith.constant 0 : index
    %61 = vector.load %arg7[%c2_52, %c0_53, %c0_54] : memref<9x128x128xbf16, #tpu.memory_space<vmem>>, vector<1x128x128xbf16>
    %62 = vector.shape_cast %61 : vector<1x128x128xbf16> to vector<128x128xbf16>
    %cst_55 = arith.constant dense<0.000000e+00> : vector<64x128xf32>
    %63 = tpu.matmul %60, %62, %cst_55 {dimension_numbers = #tpu.dot_dimension_numbers<[1], [0], [0], [1], [0, 0, 1, 1], [], []>} : vector<64x128xbf16>, vector<128x128xbf16>, vector<64x128xf32> -> vector<64x128xf32>
    %64 = arith.addf %58, %63 : vector<64x128xf32>
    %c1_56 = arith.constant 1 : index
    %c0_57 = arith.constant 0 : index
    %c0_58 = arith.constant 0 : index
    %65 = vector.load %arg10[%c1_56, %c0_57, %c0_58] : memref<6x18x128xbf16, #tpu.memory_space<vmem>>, vector<4x16x128xbf16>
    %66 = vector.shape_cast %65 : vector<4x16x128xbf16> to vector<64x128xbf16>
    %c3 = arith.constant 3 : index
    %c0_59 = arith.constant 0 : index
    %c0_60 = arith.constant 0 : index
    %67 = vector.load %arg7[%c3, %c0_59, %c0_60] : memref<9x128x128xbf16, #tpu.memory_space<vmem>>, vector<1x128x128xbf16>
    %68 = vector.shape_cast %67 : vector<1x128x128xbf16> to vector<128x128xbf16>
    %cst_61 = arith.constant dense<0.000000e+00> : vector<64x128xf32>
    %69 = tpu.matmul %66, %68, %cst_61 {dimension_numbers = #tpu.dot_dimension_numbers<[1], [0], [0], [1], [0, 0, 1, 1], [], []>} : vector<64x128xbf16>, vector<128x128xbf16>, vector<64x128xf32> -> vector<64x128xf32>
    %70 = arith.addf %64, %69 : vector<64x128xf32>
    %c1_62 = arith.constant 1 : index
    %c1_63 = arith.constant 1 : index
    %c0_64 = arith.constant 0 : index
    %71 = vector.load %arg10[%c1_62, %c1_63, %c0_64] : memref<6x18x128xbf16, #tpu.memory_space<vmem>>, vector<4x16x128xbf16>
    %72 = vector.shape_cast %71 : vector<4x16x128xbf16> to vector<64x128xbf16>
    %c4 = arith.constant 4 : index
    %c0_65 = arith.constant 0 : index
    %c0_66 = arith.constant 0 : index
    %73 = vector.load %arg7[%c4, %c0_65, %c0_66] : memref<9x128x128xbf16, #tpu.memory_space<vmem>>, vector<1x128x128xbf16>
    %74 = vector.shape_cast %73 : vector<1x128x128xbf16> to vector<128x128xbf16>
    %cst_67 = arith.constant dense<0.000000e+00> : vector<64x128xf32>
    %75 = tpu.matmul %72, %74, %cst_67 {dimension_numbers = #tpu.dot_dimension_numbers<[1], [0], [0], [1], [0, 0, 1, 1], [], []>} : vector<64x128xbf16>, vector<128x128xbf16>, vector<64x128xf32> -> vector<64x128xf32>
    %76 = arith.addf %70, %75 : vector<64x128xf32>
    %c1_68 = arith.constant 1 : index
    %c2_69 = arith.constant 2 : index
    %c0_70 = arith.constant 0 : index
    %77 = vector.load %arg10[%c1_68, %c2_69, %c0_70] : memref<6x18x128xbf16, #tpu.memory_space<vmem>>, vector<4x16x128xbf16>
    %78 = vector.shape_cast %77 : vector<4x16x128xbf16> to vector<64x128xbf16>
    %c5_71 = arith.constant 5 : index
    %c0_72 = arith.constant 0 : index
    %c0_73 = arith.constant 0 : index
    %79 = vector.load %arg7[%c5_71, %c0_72, %c0_73] : memref<9x128x128xbf16, #tpu.memory_space<vmem>>, vector<1x128x128xbf16>
    %80 = vector.shape_cast %79 : vector<1x128x128xbf16> to vector<128x128xbf16>
    %cst_74 = arith.constant dense<0.000000e+00> : vector<64x128xf32>
    %81 = tpu.matmul %78, %80, %cst_74 {dimension_numbers = #tpu.dot_dimension_numbers<[1], [0], [0], [1], [0, 0, 1, 1], [], []>} : vector<64x128xbf16>, vector<128x128xbf16>, vector<64x128xf32> -> vector<64x128xf32>
    %82 = arith.addf %76, %81 : vector<64x128xf32>
    %c2_75 = arith.constant 2 : index
    %c0_76 = arith.constant 0 : index
    %c0_77 = arith.constant 0 : index
    %83 = vector.load %arg10[%c2_75, %c0_76, %c0_77] : memref<6x18x128xbf16, #tpu.memory_space<vmem>>, vector<4x16x128xbf16>
    %84 = vector.shape_cast %83 : vector<4x16x128xbf16> to vector<64x128xbf16>
    %c6 = arith.constant 6 : index
    %c0_78 = arith.constant 0 : index
    %c0_79 = arith.constant 0 : index
    %85 = vector.load %arg7[%c6, %c0_78, %c0_79] : memref<9x128x128xbf16, #tpu.memory_space<vmem>>, vector<1x128x128xbf16>
    %86 = vector.shape_cast %85 : vector<1x128x128xbf16> to vector<128x128xbf16>
    %cst_80 = arith.constant dense<0.000000e+00> : vector<64x128xf32>
    %87 = tpu.matmul %84, %86, %cst_80 {dimension_numbers = #tpu.dot_dimension_numbers<[1], [0], [0], [1], [0, 0, 1, 1], [], []>} : vector<64x128xbf16>, vector<128x128xbf16>, vector<64x128xf32> -> vector<64x128xf32>
    %88 = arith.addf %82, %87 : vector<64x128xf32>
    %c2_81 = arith.constant 2 : index
    %c1_82 = arith.constant 1 : index
    %c0_83 = arith.constant 0 : index
    %89 = vector.load %arg10[%c2_81, %c1_82, %c0_83] : memref<6x18x128xbf16, #tpu.memory_space<vmem>>, vector<4x16x128xbf16>
    %90 = vector.shape_cast %89 : vector<4x16x128xbf16> to vector<64x128xbf16>
    %c7 = arith.constant 7 : index
    %c0_84 = arith.constant 0 : index
    %c0_85 = arith.constant 0 : index
    %91 = vector.load %arg7[%c7, %c0_84, %c0_85] : memref<9x128x128xbf16, #tpu.memory_space<vmem>>, vector<1x128x128xbf16>
    %92 = vector.shape_cast %91 : vector<1x128x128xbf16> to vector<128x128xbf16>
    %cst_86 = arith.constant dense<0.000000e+00> : vector<64x128xf32>
    %93 = tpu.matmul %90, %92, %cst_86 {dimension_numbers = #tpu.dot_dimension_numbers<[1], [0], [0], [1], [0, 0, 1, 1], [], []>} : vector<64x128xbf16>, vector<128x128xbf16>, vector<64x128xf32> -> vector<64x128xf32>
    %94 = arith.addf %88, %93 : vector<64x128xf32>
    %c2_87 = arith.constant 2 : index
    %c2_88 = arith.constant 2 : index
    %c0_89 = arith.constant 0 : index
    %95 = vector.load %arg10[%c2_87, %c2_88, %c0_89] : memref<6x18x128xbf16, #tpu.memory_space<vmem>>, vector<4x16x128xbf16>
    %96 = vector.shape_cast %95 : vector<4x16x128xbf16> to vector<64x128xbf16>
    %c8 = arith.constant 8 : index
    %c0_90 = arith.constant 0 : index
    %c0_91 = arith.constant 0 : index
    %97 = vector.load %arg7[%c8, %c0_90, %c0_91] : memref<9x128x128xbf16, #tpu.memory_space<vmem>>, vector<1x128x128xbf16>
    %98 = vector.shape_cast %97 : vector<1x128x128xbf16> to vector<128x128xbf16>
    %cst_92 = arith.constant dense<0.000000e+00> : vector<64x128xf32>
    %99 = tpu.matmul %96, %98, %cst_92 {dimension_numbers = #tpu.dot_dimension_numbers<[1], [0], [0], [1], [0, 0, 1, 1], [], []>} : vector<64x128xbf16>, vector<128x128xbf16>, vector<64x128xf32> -> vector<64x128xf32>
    %100 = arith.addf %94, %99 : vector<64x128xf32>
    %c0_93 = arith.constant 0 : index
    %c0_94 = arith.constant 0 : index
    %101 = vector.load %arg8[%c0_93, %c0_94] : memref<1x128xf32, #tpu.memory_space<vmem>>, vector<1x128xf32>
    %102 = vector.broadcast %101 : vector<1x128xf32> to vector<64x128xf32>
    %103 = arith.addf %100, %102 : vector<64x128xf32>
    %cst_95 = arith.constant 1.000000e-01 : f32
    %104 = vector.broadcast %cst_95 : f32 to vector<64x128xf32>
    %105 = arith.mulf %104, %103 : vector<64x128xf32>
    %106 = arith.maximumf %103, %105 : vector<64x128xf32>
    %107 = arith.addf %106, %6 : vector<64x128xf32>
    %108 = vector.shape_cast %107 : vector<64x128xf32> to vector<1x4x16x128xf32>
    %c0_96 = arith.constant 0 : index
    %c0_97 = arith.constant 0 : index
    %c0_98 = arith.constant 0 : index
    %c0_99 = arith.constant 0 : index
    %109 = vector.load %arg9[%c0_96, %c0_97, %c0_98, %c0_99] : memref<1x4x16x128xf32, #tpu.memory_space<vmem>>, vector<1x4x16x128xf32>
    tpu.vector_store %arg9[%c0_96, %c0_97, %c0_98, %c0_99], %108 {strides = array<i32>} : memref<1x4x16x128xf32, #tpu.memory_space<vmem>>, vector<1x4x16x128xf32>,
    return
  }
  func.func @transform_0(%arg0: i32, %arg1: i32) -> (i32, i32, i32, i32) {
    %c0_i32 = arith.constant 0 : i32
    %c0_i32_0 = arith.constant 0 : i32
    %c0_i32_1 = arith.constant 0 : i32
    return %arg0, %arg1, %c0_i32, %c0_i32_0 : i32, i32, i32, i32
  }
  func.func @transform_1(%arg0: i32, %arg1: i32) -> (i32, i32, i32, i32) {
    %c0_i32 = arith.constant 0 : i32
    %c0_i32_0 = arith.constant 0 : i32
    %c0_i32_1 = arith.constant 0 : i32
    return %arg0, %arg1, %c0_i32, %c0_i32_0 : i32, i32, i32, i32
  }
  func.func @transform_2(%arg0: i32, %arg1: i32) -> (i32, i32, i32, i32) {
    %c0_i32 = arith.constant 0 : i32
    %c0_i32_0 = arith.constant 0 : i32
    %c0_i32_1 = arith.constant 0 : i32
    return %arg0, %arg1, %c0_i32, %c0_i32_0 : i32, i32, i32, i32
  }
  func.func @transform_3(%arg0: i32, %arg1: i32) -> (i32, i32) {
    %c0_i32 = arith.constant 0 : i32
    %c0_i32_0 = arith.constant 0 : i32
    %c0_i32_1 = arith.constant 0 : i32
    return %c0_i32, %c0_i32_0 : i32, i32
  }
  func.func @transform_4(%arg0: i32, %arg1: i32) -> (i32, i32) {
    %c0_i32 = arith.constant 0 : i32
    %c0_i32_0 = arith.constant 0 : i32
    %c0_i32_1 = arith.constant 0 : i32
    return %c0_i32, %c0_i32_0 : i32, i32
  }
  func.func @transform_5(%arg0: i32, %arg1: i32) -> (i32, i32, i32) {
    %c0_i32 = arith.constant 0 : i32
    %c0_i32_0 = arith.constant 0 : i32
    %c0_i32_1 = arith.constant 0 : i32
    %c0_i32_2 = arith.constant 0 : i32
    return %c0_i32, %c0_i32_0, %c0_i32_1 : i32, i32, i32
  }
  func.func @transform_6(%arg0: i32, %arg1: i32) -> (i32, i32) {
    %c0_i32 = arith.constant 0 : i32
    %c0_i32_0 = arith.constant 0 : i32
    %c0_i32_1 = arith.constant 0 : i32
    return %c0_i32, %c0_i32_0 : i32, i32
  }
  func.func @transform_7(%arg0: i32, %arg1: i32) -> (i32, i32, i32, i32) {
    %c0_i32 = arith.constant 0 : i32
    %c0_i32_0 = arith.constant 0 : i32
    %c0_i32_1 = arith.constant 0 : i32
    return %arg0, %arg1, %c0_i32, %c0_i32_0 : i32, i32, i32, i32
  }
}

</mosaic_0001>

<bundles_post_ra>
// kernel: tpu_custom_call.1
= control target key start
LH: loop header
LB: loop body
LE: loop exit
PB: predicated region body
PF: predicated region fallthrough
CT: control target
= control target key end

     0   :  { %s5072_s0 = inlined_call_operand.hbm [shape: f32[2,16,16,128], index: 0, kind: input, shape index: {}]   ;;  %s5073_s1 = inlined_call_operand.hbm [shape: f32[2,4,16,128], index: 1, kind: input, shape index: {}]   ;;  %s5074_s2 = inlined_call_operand.hbm [shape: f32[2,4,16,128], index: 2, kind: input, shape index: {}]   ;;  %s5075_s3 = inlined_call_operand.hbm [shape: bf16[128,128], index: 3, kind: input, shape index: {}]   ;;  %s5076_s4 = inlined_call_operand.vmem [shape: f32[1,128], index: 4, kind: input, shape index: {}]   ;;  %s5077_s5 = inlined_call_operand.hbm [shape: bf16[9,128,128], index: 5, kind: input, shape index: {}]   ;;  %s5078_s6 = inlined_call_operand.vmem [shape: f32[1,128], index: 6, kind: input, shape index: {}]   ;;  %s5079_s7 = inlined_call_operand.hbm [shape: f32[2,16,16,128], index: 7, kind: output, shape index: {}]  }
   0x1   :  { %5105 = sst [smem:[#allocation28_spill]] %s5073_s1 }
   0x2   :  { %5106 = sst [smem:[#allocation29_spill]] %s5075_s3 }
   0x3   :  { %5107 = sst [smem:[#allocation30_spill]] %s5076_s4 }
   0x4   :  { %5108 = sst [smem:[#allocation31_spill]] %s5078_s6 }
   0x5   :  { %5109 = sst [smem:[#allocation32_spill]] %s5079_s7 }
   0x6   :  { %12 = vsyncpa [#allocation4], 0 }
   0x7   :  { %14 = vsyncpa [#allocation4 + $0x1], 0 }
   0x8   :  { %15 = vsyncpa [#allocation7], 0 }
   0x9   :  { %17 = vsyncpa [#allocation7 + $0x1], 0 }
   0xa   :  { %18 = vsyncpa [#allocation10], 0 }
   0xb   :  { %19 = vsyncpa [#allocation5], 0 }
   0xc   :  { %21 = vsyncpa [#allocation5 + $0x1], 0  ;;  %s4244_s24 = smov 0   ;;  %s4246_s25 = smov 0  }
   0xd   :  { %s4248_s26 = smov 0   ;;  %s4250_s27 = smov 0  }
   0xe   :  { %s4252_s28 = smov 0   ;;  %s4254_s29 = smov 0  }
   0xf   :  { %s4256_s30 = smov 0   ;;  %s4258_s8 = smov 0  }
  0x10 LB: > { %5110 = sst [smem:[#allocation17_spill]] %s4158_s24  ;;  %s4285_s9 = sadd.s32 4294967295, %s4186_s8   ;;  %s4186_s8 = sphi %s4258_s8, %s27_s8   ;;  %s4182_s30 = sphi %s4256_s30, %s5179_s30   ;;  %s4178_s29 = sphi %s4254_s29, %s5178_s29   ;;  %s4174_s28 = sphi %s4252_s28, %s5177_s28   ;;  %s4170_s27 = sphi %s4250_s27, %s5176_s27   ;;  %s4166_s26 = sphi %s4248_s26, %s5171_s26   ;;  %s4162_s25 = sphi %s4246_s25, %s5175_s25   ;;  %s4158_s24 = sphi %s4244_s24, %s5174_s24  }
  0x11   : > { %5111 = sst [smem:[#allocation18_spill]] %s4166_s26  ;;  %s3051_s10 = sadd.s32 4294967294, %s4186_s8  }
  0x12   : > { %5112 = sst [smem:[#allocation19_spill]] %s4170_s27  ;;  %p55_p0 = scmp.ne.s32.totalorder %s4166_s26, %s4162_s25 }
  0x13   : > { %5113 = sst [smem:[#allocation20_spill]] %s4174_s28  ;;  %p56_p1 = scmp.eq.s32.totalorder %s4186_s8, 0 }
  0x14   : > { %5114 = sst [smem:[#allocation21_spill]] %s4186_s8  ;;  %p61_p2 = scmp.ne.s32.totalorder %s4162_s25, %s4158_s24 }
  0x15   : > { %5115 = sst [smem:[#allocation22_spill]] %s4285_s9  ;;  %p5083_p3 = scmp.eq.s32.totalorder %s4285_s9, 0 }
  0x16   : > { %p227_p4 = scmp.eq.s32.totalorder %s4285_s9, 7  ;;  %p4296_p5 = por %p56_p1, %p55_p0 }
  0x17   : > { %p233_p6 = scmp.eq.s32.totalorder %s3051_s10, 7  ;;  %p4302_p7 = por %p5083_p3, %p61_p2 }
  0x18   : > { %s5116_s12 = scalar_select %p4296_p5, 1, 0 }
  0x19   : > { %s5117_s13 = scalar_select %p4302_p7, 1, 0 }
  0x1a   : > { %p4306_p8 = por %p227_p4, %p55_p0  ;;  %p4310_p9 = por %p233_p6, %p61_p2 }
  0x1b   : > { %p3052_p10 = scmp.ge.s32.totalorder %s4186_s8, 1  ;;  %p240_p11 = scmp.lt.s32.totalorder %s4186_s8, 9 }
  0x1c   : > { %s5118_s14 = scalar_select %p4306_p8, 1, 0 }
  0x1d   : > { %s5120_s15 = scalar_select %p4310_p9, 1, 0 }
  0x1e   : > { %5119 = sst [smem:[#allocation23_spill]] %s5118_s14  ;;  %p4316_p12 = pnand %p3052_p10, %p240_p11 }
  0x1f   : > { %5121 = sst [smem:[#allocation24_spill]] %s5120_s15  ;;  %s4188_s17 = smov [#allocation9]  }
  0x20   : > { %s5122_s16 = scalar_select %p4316_p12, 1, 0 }
  0x21   : > { %s252_s18 = sshll.u32 %s4188_s17, 4  ;;  %p3739_p13 = pneg %p4316_p12  ;;  %s253_s18 = int_to_ptr.vmem [resolvable:$true] %s252_s18 }
  0x22   : > { %s39_s20 = sadd.s32 1, %s4182_s30  ;;  %s36_s21 = sadd.s32 1, %s4178_s29 }
  0x23   : > { %p4324_p0 = pnand %p3739_p13, %p5083_p3  ;;  %s5124_s3 = sld [smem:[#allocation29_spill]] }
  0x25   : > { %s5123_s19 = scalar_select %p4324_p0, 1, 0 }
  0x26   : > { %p5095_p2 = pneg %p4324_p0 }
  0x29   : > { %s3934_s10 = scalar_lea.hbm %s5124_s3, 1024 }
  0x2a   : > { %p3935_p1 = scmp.ne.s32.totalorder %s5124_s3, %s3934_s10  ;;  %p3941_p10 = scmp.lt.u32.totalorder %s3934_s10, %s5124_s3 }
  0x2c   : > { %p3937_p4 = pnand %p5095_p2, %p3935_p1 }
  0x2e   : > { %p3938_p6 = pneg %p3937_p4 }
  0x30   : > { %p3943_p11 = pnand %p3941_p10, %p3938_p6 }
  0x32   : > { %3946 = shalt.err (!%p3943_p11)
}
  0x33   : > { %s3947_s7 = scalar_lea.vmem %s253_s18, 1024  ;;  %p3955_p8 = scmp.lt.s32.totalorder %s253_s18, %s253_s18 }
  0x34   : > { %p3948_p13 = scmp.ne.s32.totalorder %s253_s18, %s3947_s7  ;;  %p3956_p7 = scmp.lt.s32.totalorder %s3947_s7, %s3947_s7 }
  0x36   : > { %p3950_p3 = pnand %p3948_p13, %p5095_p2  ;;  %p3957_p12 = por %p3956_p7, %p3955_p8 }
  0x38   : > { %p3951_p9 = pneg %p3950_p3 }
  0x3a   : > { %p3958_p5 = pnand %p3957_p12, %p3951_p9 }
  0x3c   : > { %3961 = shalt.err (!%p3958_p5)
}
  0x3d   : > { %s5087_s11 = smov 64   ;;  %s5088_s24 = smov 4  }
  0x3e   : > { %3742 = dma.hbm_to_vmem [thread:$0]  (!%p4324_p0), %s5124_s3, 1024, %s253_s18, [#allocation10], %s5087_s11, %s5087_s11, %s5088_s24  }
  0x3f   : > { %p37_p3 = scmp.ge.s32.totalorder %s36_s21, 4  ;;  %p3762_p5 = scmp.lt.s32.totalorder %s4186_s8, 8 }
  0x40   : > { %s4357_s22 = sand.u32 1, %s4166_s26   ;;  %p5126_p7 = scmp.ne.s32.totalorder %s5116_s12, 0 }
  0x41   : > { %s5181_s21 = smov (%p37_p3, %s36_s21), 0  ;;  %s5183_s20 = smov (!%p37_p3, %s39_s20), %s4182_s30 }
  0x42   : > { %5125 = sst [smem:[#allocation25_spill]] %s5181_s21  ;;  %s44_s23 = ssub.s32 %s4178_s29, %s5181_s21 }
  0x43   : > { %p4366_p8 = pnand %p3762_p5, %p5126_p7  ;;  %p41_p9 = scmp.ge.s32.totalorder %s5183_s20, 2 }
  0x44   : > { %s309_s18 = sand.u32 1, %s4186_s8   ;;  %s3061_s17 = sshll.u32 %s4357_s22, 4 }
  0x45   : > { %s5127_s10 = scalar_select %p4366_p8, 1, 0 }
  0x46   : > { %s5185_s20 = smov (%p41_p9, %s5183_s20), 0  ;;  %s3062_s11 = sshll.u32 %s4178_s29, 1 }
  0x47   : > { %5128 = sst [smem:[#allocation26_spill]] %s5185_s20  ;;  %s43_s15 = ssub.s32 %s4182_s30, %s5185_s20 }
  0x48   : > { %s45_s7 = sor.u32 %s44_s23, %s43_s15  ;;  %s3063_s24 = sshll.u32 %s4182_s30, 3 }
  0x49   : > { %p46_p12 = scmp.eq.s32.totalorder %s45_s7, 0  ;;  %s4378_s3 = sadd.s32 %s3063_s24, %s3062_s11 }
  0x4a   : > { %s313_s12 = scalar_lea.vmem [#allocation6], %s3061_s17  ;;  %s5129_s14 = sadd.s32 1, %s4166_s26 }
  0x4b   : > { %s322_s21 = sshll.u32 %s313_s12, 4  ;;  %s3064_s8 = sshll.u32 %s4378_s3, 7  ;;  %s4388_s21 = int_to_ptr.vmem [resolvable:$true] %s322_s21 }
  0x4c   : > { %s4385_s28 = scalar_select %p46_p12, %s4166_s26, %s5129_s14  }
  0x4d   : > { %s5131_s1 = sld [smem:[#allocation28_spill]]  ;;  %s4397_s11 = scalar_lea.sflag [#allocation7], %s309_s18 }
  0x4e   : > { %5130 = sst [smem:[#allocation27_spill]] %s4385_s28  ;;  %p4403_p4 = pneg %p4366_p8 }
  0x50   : > { %s5132_s14 = scalar_select %p4403_p4, 1, 0 }
  0x53   : > { %s4395_s23 = scalar_lea.hbm %s5131_s1, %s3064_s8  ;;  %s3967_s15 = scalar_lea.hbm %s5131_s1, 2048 }
  0x54   : > { %s3962_s24 = scalar_lea.hbm %s4395_s23, 256  ;;  %p3968_p11 = scmp.lt.u32.totalorder %s4395_s23, %s5131_s1 }
  0x55   : > { %p3963_p1 = scmp.ne.s32.totalorder %s4395_s23, %s3962_s24  ;;  %p3969_p13 = scmp.lt.u32.totalorder %s3967_s15, %s3962_s24 }
  0x56   : > { %p3971_p5 = scmp.lt.u32.totalorder %s3962_s24, %s4395_s23 }
  0x57   : > { %p3965_p6 = pnand %p4403_p4, %p3963_p1  ;;  %p3970_p3 = por %p3969_p13, %p3968_p11 }
  0x59   : > { %p3966_p10 = pneg %p3965_p6  ;;  %p3972_p7 = por %p3971_p5, %p3970_p3 }
  0x5b   : > { %p3973_p9 = pnand %p3972_p7, %p3966_p10 }
  0x5d   : > { %3976 = shalt.err (!%p3973_p9)
}
  0x5e   : > { %s3977_s18 = scalar_lea.vmem %s4388_s21, 256  ;;  %s4191_s6 = smov [#allocation6]  }
  0x5f   : > { %p3978_p12 = scmp.ne.s32.totalorder %s4388_s21, %s3977_s18  ;;  %s3982_s20 = sshll.u32 %s4191_s6, 4  ;;  %s3983_s20 = int_to_ptr.vmem [resolvable:$false] %s3982_s20 }
  0x60   : > { %s3984_s7 = scalar_lea.vmem %s3983_s20, 512  ;;  %p3985_p2 = scmp.lt.s32.totalorder %s4388_s21, %s3983_s20 }
  0x61   : > { %p3980_p1 = pnand %p3978_p12, %p4403_p4  ;;  %p3986_p0 = scmp.lt.s32.totalorder %s3984_s7, %s3977_s18 }
  0x63   : > { %p3981_p6 = pneg %p3980_p1  ;;  %p3987_p11 = por %p3986_p0, %p3985_p2 }
  0x65   : > { %p3988_p13 = pnand %p3987_p11, %p3981_p6 }
  0x67   : > { %3991 = shalt.err (!%p3988_p13)
}
  0x68   : > { %s4192_s24 = smov 128   ;;  %s4193_s15 = smov 8  }
  0x69   : > { %3752 = dma.hbm_to_vmem [thread:$0]  (!%p4366_p8), %s4395_s23, 256, %s4388_s21, %s4397_s11, %s4192_s24, %s4192_s24, %s4193_s15  }
  0x6a   : > { %s4435_s6 = scalar_lea.hbm %s5074_s2, %s3064_s8  ;;  %s4439_s20 = scalar_lea.vmem [#allocation8], %s3061_s17 }
  0x6b   : > { %s345_s7 = sshll.u32 %s4439_s20, 4  ;;  %s4194_s1 = smov [#allocation11]   ;;  %s4470_s7 = int_to_ptr.vmem [resolvable:$true] %s345_s7 }
  0x6c   : > { %s268_s28 = sshll.u32 %s4194_s1, 4  ;;  %s3056_s26 = sshll.u32 %s4357_s22, 6  ;;  %s269_s28 = int_to_ptr.vmem [resolvable:$true] %s268_s28 }
  0x6d   : > { %s3992_s9 = scalar_lea.hbm %s5077_s5, 9216  ;;  %p5133_p2 = scmp.ne.s32.totalorder %s5123_s19, 0 }
  0x6e   : > { %p3993_p0 = scmp.ne.s32.totalorder %s5077_s5, %s3992_s9  ;;  %p3999_p7 = scmp.lt.u32.totalorder %s3992_s9, %s5077_s5 }
  0x6f   : > { %p5134_p10 = pneg %p5133_p2 }
  0x71   : > { %p3995_p3 = pnand %p3993_p0, %p5134_p10 }
  0x73   : > { %p3996_p5 = pneg %p3995_p3 }
  0x75   : > { %p4001_p9 = pnand %p3999_p7, %p3996_p5 }
  0x77   : > { %4004 = shalt.err (!%p4001_p9)
}
  0x78   : > { %s4005_s1 = scalar_lea.vmem %s269_s28, 9216  ;;  %p5135_p1 = pmov %p5134_p10 }
  0x79   : > { %p4006_p12 = scmp.ne.s32.totalorder %s269_s28, %s4005_s1  ;;  %p4013_p13 = scmp.lt.s32.totalorder %s269_s28, %s269_s28 }
  0x7a   : > { %p4014_p8 = scmp.lt.s32.totalorder %s4005_s1, %s4005_s1 }
  0x7b   : > { %p4008_p6 = pnand %p4006_p12, %p5135_p1 }
  0x7c   : > { %p4015_p4 = por %p4014_p8, %p4013_p13 }
  0x7d   : > { %p4009_p11 = pneg %p4008_p6 }
  0x7f   : > { %p4016_p0 = pnand %p4015_p4, %p4009_p11 }
  0x81   : > { %4019 = shalt.err (!%p4016_p0)
}
  0x82   : > { %s5136_s4 = smov 4   ;;  %s5137_s27 = smov 64  }
  0x83   : > { %3745 = dma.hbm_to_vmem [thread:$0]  (!%p5133_p2), %s5077_s5, 9216, %s269_s28, [#allocation10], %s5137_s27, %s5137_s27, %s5136_s4  }
  0x84   : > { %s3227_s12 = sshll.u32 %s4178_s29, 3  ;;  %s3059_s18 = sshll.u32 %s4182_s30, 5 }
  0x85   : > { %s289_s20 = scalar_lea.vmem [#allocation3], %s3056_s26  ;;  %s296_s3 = sadd.s32 %s3227_s12, %s3059_s18 }
  0x86   : > { %s299_s21 = sshll.u32 %s289_s20, 4  ;;  %s3060_s19 = sshll.u32 %s296_s3, 7  ;;  %s4468_s21 = int_to_ptr.vmem [resolvable:$true] %s299_s21 }
  0x87   : > { %s4475_s1 = scalar_lea.hbm %s5072_s0, %s3060_s19  ;;  %s286_s28 = scalar_lea.sflag [#allocation4], %s4357_s22 }
  0x88   : > { %s4020_s4 = scalar_lea.hbm %s4475_s1, 1024  ;;  %p5138_p4 = scmp.ne.s32.totalorder %s5132_s14, 0 }
  0x89   : > { %p4021_p8 = scmp.ne.s32.totalorder %s4475_s1, %s4020_s4  ;;  %s4025_s9 = scalar_lea.hbm %s5072_s0, 8192 }
  0x8a   : > { %p4026_p3 = scmp.lt.u32.totalorder %s4475_s1, %s5072_s0  ;;  %p4027_p5 = scmp.lt.u32.totalorder %s4025_s9, %s4020_s4 }
  0x8b   : > { %p4023_p2 = pnand %p4021_p8, %p5138_p4  ;;  %p4029_p9 = scmp.lt.u32.totalorder %s4020_s4, %s4475_s1 }
  0x8c   : > { %p4028_p7 = por %p4027_p5, %p4026_p3 }
  0x8d   : > { %p4024_p10 = pneg %p4023_p2 }
  0x8e   : > { %p4030_p12 = por %p4029_p9, %p4028_p7 }
  0x90   : > { %p4031_p1 = pnand %p4030_p12, %p4024_p10 }
  0x92   : > { %4034 = shalt.err (!%p4031_p1)
}
  0x93   : > { %s4035_s18 = scalar_lea.vmem %s4468_s21, 1024  ;;  %s4195_s20 = smov [#allocation3]  }
  0x94   : > { %p4036_p6 = scmp.ne.s32.totalorder %s4468_s21, %s4035_s18  ;;  %s4040_s3 = sshll.u32 %s4195_s20, 4  ;;  %s4041_s3 = int_to_ptr.vmem [resolvable:$false] %s4040_s3 }
  0x95   : > { %s4042_s19 = scalar_lea.vmem %s4041_s3, 2048  ;;  %p4043_p0 = scmp.lt.s32.totalorder %s4468_s21, %s4041_s3 }
  0x96   : > { %p4038_p11 = pnand %p4036_p6, %p5138_p4  ;;  %p4044_p8 = scmp.lt.s32.totalorder %s4042_s19, %s4035_s18 }
  0x98   : > { %p4039_p13 = pneg %p4038_p11  ;;  %p4045_p2 = por %p4044_p8, %p4043_p0 }
  0x9a   : > { %p4046_p3 = pnand %p4045_p2, %p4039_p13 }
  0x9c   : > { %4049 = shalt.err (!%p4046_p3)
}
  0x9d   : > { %p5139_p10 = scmp.ne.s32.totalorder %s5127_s10, 0  ;;  %s4050_s8 = scalar_lea.hbm %s4435_s6, 256 }
  0x9e   : > { %p4051_p5 = scmp.ne.s32.totalorder %s4435_s6, %s4050_s8  ;;  %s4055_s26 = scalar_lea.hbm %s5074_s2, 2048 }
  0x9f   : > { %3749 = dma.hbm_to_vmem [thread:$0]  (!%p5139_p10), %s4475_s1, 1024, %s4468_s21, %s286_s28, %s4192_s24, %s4192_s24, %s4193_s15  }
  0xa0   : > { %p4053_p7 = pnand %p4051_p5, %p5138_p4  ;;  %p4056_p12 = scmp.lt.u32.totalorder %s4435_s6, %s5074_s2 }
  0xa1   : > { %p4057_p1 = scmp.lt.u32.totalorder %s4055_s26, %s4050_s8  ;;  %p4059_p11 = scmp.lt.u32.totalorder %s4050_s8, %s4435_s6 }
  0xa2   : > { %p4054_p9 = pneg %p4053_p7 }
  0xa3   : > { %p4058_p6 = por %p4057_p1, %p4056_p12 }
  0xa5   : > { %p4060_p13 = por %p4059_p11, %p4058_p6 }
  0xa7   : > { %p4061_p0 = pnand %p4060_p13, %p4054_p9 }
  0xa9   : > { %4064 = shalt.err (!%p4061_p0)
}
  0xaa   : > { %s4065_s22 = scalar_lea.vmem %s4470_s7, 256  ;;  %s4196_s21 = smov [#allocation8]  }
  0xab   : > { %p4066_p8 = scmp.ne.s32.totalorder %s4470_s7, %s4065_s22  ;;  %s4070_s1 = sshll.u32 %s4196_s21, 4  ;;  %s4071_s1 = int_to_ptr.vmem [resolvable:$false] %s4070_s1 }
  0xac   : > { %s4072_s28 = scalar_lea.vmem %s4071_s1, 512  ;;  %p4073_p5 = scmp.lt.s32.totalorder %s4470_s7, %s4071_s1 }
  0xad   : > { %p4068_p2 = pnand %p4066_p8, %p5138_p4  ;;  %p4074_p7 = scmp.lt.s32.totalorder %s4072_s28, %s4065_s22 }
  0xaf   : > { %p4069_p3 = pneg %p4068_p2  ;;  %p4075_p12 = por %p4074_p7, %p4073_p5 }
  0xb1   : > { %p4076_p1 = pnand %p4075_p12, %p4069_p3 }
  0xb3   : > { %4079 = shalt.err (!%p4076_p1)
}
  0xb4   : > { %3755 = dma.hbm_to_vmem [thread:$0]  (!%p5139_p10), %s4435_s6, 256, %s4470_s7, %s4397_s11, %s4192_s24, %s4192_s24, %s4193_s15  }
  0xb5   : > { %p5140_p4 = scmp.ne.s32.totalorder %s5122_s16, 0 }
  0xb6   : > { %s4532_s14 = sand.u32 (!%p5140_p4), 1, %s4162_s25   ;;  %p5141_p9 = scmp.ne.s32.totalorder (!%p5140_p4), %s5117_s13, 0 }
  0xb7   : > { %357 = sbr.rel (%p5140_p4) target bundleno = 986 (0x3da), region = 48  ;;  %s3070_s23 = sshll.u32 (!%p5140_p4), %s4532_s14, 6 }
  0xb8   : > { %s360_s12 = scalar_lea.sflag (!%p5140_p4), [#allocation4], %s4532_s14  ;;  %s4538_s10 = scalar_lea.vmem (!%p5140_p4), [#allocation3], %s3070_s23 }
  0xbe   : > { %4141 = dma.done.wait (%p5141_p9), %s360_s12, 1024  }
  0xbf   : > { %4143 = vsyncadd (%p5141_p9), %s360_s12, 4294966272  ;;  %s5142_s11 = sld [smem:[#allocation22_spill]]  ;;  %s3071_s24 = sshll.u32 %s4532_s14, 4 }
  0xc0   : > { %s4546_s6 = scalar_lea.vmem [#allocation6], %s3071_s24 }
  0xc5   : > { %s368_s16 = sand.u32 1, %s5142_s11  }
  0xc6   : > { %s369_s15 = scalar_lea.sflag [#allocation7], %s368_s16 }
  0xc7   : > { %4145 = dma.done.wait (%p5141_p9), %s369_s15, 512  }
  0xc8   : > { %4147 = vsyncadd (%p5141_p9), %s369_s15, 4294966784  ;;  %s4552_s7 = scalar_lea.vmem [#allocation8], %s3071_s24  ;;  %p5143_p10 = scmp.eq.s32.totalorder %s5142_s11, 0 }
  0xca   : > { %4149 = dma.done.wait (%p5143_p10), [#allocation10], 10240   ;;  %p5144_p6 = pmov %p5143_p10 }
  0xcb   : > { %v4558_v0 = vld [vmem:[#allocation9] sm:$0xff]   ;;  %v4560_v1 = vld [vmem:[#allocation9 + $0x8] sm:$0xff]   ;;  %v4565_v2 = vld [vmem:[#allocation9 + $0x10] sm:$0xff]   ;;  %vm450_vm0 = vcmask 1040384   ;;  %vm451_vm1 = vsmask.f32 256 }
  0xcc   : > { %4151 = vsyncadd (%p5144_p6), [#allocation10], 4294957056  ;;  %3379 = vmatprep.subr.bf16.mxu0 %v4558_v0  ;;  %v4569_v3 = vld [vmem:[#allocation9 + $0x18] sm:$0xff]   ;;  %v4572_v4 = vld [vmem:[%s4538_s10] sm:$0xff]  ;;  %v4197_v20 = vmov 0.0   ;;  %vm4198_vm3 = vmmov 0  }
  0xcd   : > { %3380 = vmatpush3.bf16.msra.mxu0 %v4558_v0  ;;  %v4575_v5 = vld [vmem:[%s4538_s10 + $0x8] sm:$0xff]  ;;  %vm4581_vm2 = vmand %vm450_vm0, %vm451_vm1  ;;  %v3846_v8 = vld [vmem:[#allocation9 + $0x20] sm:$0xff]   ;;  %vm471_vm4 = vsmask.f32 7938  ;;  %s5149_s20 = sld [smem:[#allocation30_spill]]  ;;  %vm745_vm6 = vcmask 1043456  }
  0xce   : > { %3381 = vmatprep.subr.bf16.mxu0 %v4560_v1  ;;  %v499_v6 = vpack.c.bf16 %v4575_v5, %v4572_v4  ;;  %v459_v9 = vld [vmem:[#allocation2 + $0x18] sm:$0x1]  ;;  %v3847_v11 = vld [vmem:[#allocation9 + $0x28] sm:$0xff]   ;;  %v3849_v13 = vld [vmem:[#allocation9 + $0x38] sm:$0xff]   ;;  %vm662_vm7 = vsmask.f32 4368 }
  0xcf   : > { %v460_v10 = vsel %vm4581_vm2, 0, %v459_v9  ;;  %v3848_v12 = vld [vmem:[#allocation9 + $0x30] sm:$0xff]   ;;  %v4594_v15 = vld [vmem:[%s4538_s10 + $0x18] sm:$0xff]  ;;  %v4597_v16 = vld [vmem:[%s4538_s10 + $0x20] sm:$0xff]  ;;  %s4723_s3 = scalar_lea.vmem [#allocation12], %s3070_s23  ;;  %s5154_s19 = sld [smem:[#allocation19_spill]] }
  0xd0   : > { %3395 = vmatprep.mubr.bf16.mxu0 %v499_v6  ;;  %461 = vst [vmem:[#allocation2 + $0x18] sm:$0x1] %v460_v10  ;;  %v4591_v14 = vld [vmem:[%s4538_s10 + $0x10] sm:$0xff]  ;;  %v4600_v17 = vld [vmem:[%s4538_s10 + $0x28] sm:$0xff]  ;;  %v4611_v22 = vld [vmem:[%s4538_s10 + $0x38] sm:$0xff] }
  0xd1   : > { %3382 = vmatpush3.bf16.msra.mxu0 %v4560_v1  ;;  %v500_v18 = vpack.c.bf16 %v4594_v15, %v4591_v14  ;;  %v501_v19 = vpack.c.bf16 %v4600_v17, %v4597_v16  ;;  %v4608_v21 = vld [vmem:[%s4538_s10 + $0x30] sm:$0xff]  ;;  %v776_v25 = vld [vmem:[%s4546_s6 + $0x8] sm:$0xff]  ;;  %vm4630_vm5 = vmand %vm450_vm0, %vm471_vm4 }
  0xd2   : > { %3383 = vmatprep.subr.bf16.mxu0 %v4565_v2  ;;  %v502_v23 = vpack.c.bf16 %v4611_v22, %v4608_v21  ;;  %v775_v24 = vld [vmem:[%s4546_s6] sm:$0xff]  ;;  %v857_v28 = vld [vmem:[%s4552_s7 + $0x8] sm:$0xff]  ;;  %vm4669_vm8 = vmand %vm745_vm6, %vm471_vm4 }
  0xd3   : > { %v777_v26 = vpack.c.bf16 %v776_v25, %v775_v24  ;;  %v856_v27 = vld [vmem:[%s4552_s7] sm:$0xff]  ;;  %v479_v33 = vld [vmem:[#allocation2 + $0x20] sm:$0x1]  ;;  %v476_v35 = vld [vmem:[#allocation2 + $0x14] sm:$0x1] }
  0xd4   : > { %v858_v29 = vpack.c.bf16 %v857_v28, %v856_v27  ;;  %v456_v31 = vld [vmem:[#allocation2 + $0xc] sm:$0x1]  ;;  %v480_v34 = vsel %vm4630_vm5, 0, %v479_v33  ;;  %v477_v36 = vsel %vm4630_vm5, 0, %v476_v35  ;;  %v465_v37 = vld [vmem:[#allocation2 + $0x30] sm:$0x1]  ;;  %vm4675_vm9 = vmor %vm451_vm1, %vm662_vm7 }
  0xd5   : > { %3384 = vmatpush3.bf16.msra.mxu0 %v4565_v2  ;;  %v457_v32 = vsel %vm4581_vm2, 0, %v456_v31  ;;  %481 = vst [vmem:[#allocation2 + $0x20] sm:$0x1] %v480_v34  ;;  %478 = vst [vmem:[#allocation2 + $0x14] sm:$0x1] %v477_v36  ;;  %v466_v38 = vsel %vm4581_vm2, 0, %v465_v37 }
  0xd6   : > { %3385 = vmatprep.subr.bf16.mxu0 %v4569_v3  ;;  %458 = vst [vmem:[#allocation2 + $0xc] sm:$0x1] %v457_v32  ;;  %467 = vst [vmem:[#allocation2 + $0x30] sm:$0x1] %v466_v38  ;;  %v462_v39 = vld [vmem:[#allocation2 + $0x24] sm:$0x1] }
  0xd7   : > { %v463_v40 = vsel %vm4581_vm2, 0, %v462_v39  ;;  %v485_v41 = vld [vmem:[#allocation2 + $0x38] sm:$0x1]  ;;  %v482_v43 = vld [vmem:[#allocation2 + $0x2c] sm:$0x1]  ;;  %p3097_p11 = scmp.ne.s32.totalorder %s5154_s19, 0 }
  0xd8   : > { %464 = vst [vmem:[#allocation2 + $0x24] sm:$0x1] %v463_v40  ;;  %v486_v42 = vsel %vm4630_vm5, 0, %v485_v41  ;;  %v483_v44 = vsel %vm4630_vm5, 0, %v482_v43  ;;  %v453_v45 = vld [vmem:[#allocation2] sm:$0x1] }
  0xd9   : > { %3386 = vmatpush3.bf16.msra.mxu0 %v4569_v3  ;;  %487 = vst [vmem:[#allocation2 + $0x38] sm:$0x1] %v486_v42  ;;  %484 = vst [vmem:[#allocation2 + $0x2c] sm:$0x1] %v483_v44  ;;  %v454_v46 = vsel %vm4581_vm2, 0, %v453_v45 }
  0xda   : > { %3387 = vmatprep.subr.bf16.mxu0 %v3846_v8  ;;  %455 = vst [vmem:[#allocation2] sm:$0x1] %v454_v46  ;;  %v473_v47 = vld [vmem:[#allocation2 + $0x8] sm:$0x1]  ;;  %v468_v49 = vld [vmem:[#allocation2 + $0x3c] sm:$0x1] }
  0xdb   : > { %v474_v48 = vsel %vm4630_vm5, 0, %v473_v47  ;;  %v469_v50 = vsel %vm4581_vm2, 0, %v468_v49  ;;  %v488_v51 = vld [vmem:[#allocation2 + $0x44] sm:$0x1]  ;;  %v4659_v53 = vld [vmem:[%s5149_s20] ss:$0 sm:$0xff] }
  0xdc   : > { %475 = vst [vmem:[#allocation2 + $0x8] sm:$0x1] %v474_v48  ;;  %470 = vst [vmem:[#allocation2 + $0x3c] sm:$0x1] %v469_v50  ;;  %v489_v52 = vsel %vm4630_vm5, 0, %v488_v51 }
  0xdd   : > { %3388 = vmatpush3.bf16.msra.mxu0 %v3846_v8  ;;  %490 = vst [vmem:[#allocation2 + $0x44] sm:$0x1] %v489_v52  ;;  %v747_v41 = vld [vmem:[#allocation2 + $0xc] sm:$0xf]  ;;  %v758_v47 = vld [vmem:[#allocation2 + $0x20] sm:$0x1] }
  0xde   : > { %3389 = vmatprep.subr.bf16.mxu0 %v3847_v11 }
  0xe1   : > { %3390 = vmatpush3.bf16.msra.mxu0 %v3847_v11 }
  0xe2   : > { %3391 = vmatprep.subr.bf16.mxu0 %v3848_v12 }
  0xe5   : > { %3392 = vmatpush3.bf16.msra.mxu0 %v3848_v12 }
  0xe6   : > { %3393 = vmatprep.subr.bf16.mxu0 %v3849_v13 }
  0xe9   : > { %3394 = vmatpush3.bf16.msra.mxu0 %v3849_v13 }
  0xea   : > { %3403 = vmatprep.subr.bf16.mxu0 %v4197_v20 }
  0xec   : > { %3396 = vmatmul.mubr.bf16.vlgmr.msra.gmra.mrb[0].mxu0 %v500_v18 }
  0xed   : > { %3404 = vmatpush3.bf16.msra.mxu0 %v4558_v0  ;;  %3399 = vmatprep.mubr.bf16.mxu0 %v501_v19 }
  0xee   : > { %3405 = vmatprep.subr.bf16.mxu0 %v4197_v20 }
  0xf1   : > { %3406 = vmatpush3.bf16.msra.mxu0 %v4560_v1 }
  0xf2   : > { %3407 = vmatprep.subr.bf16.mxu0 %v4197_v20 }
  0xf4   : > { %3400 = vmatmul.mubr.bf16.gmra.mrb[4].mxu0 %v502_v23  ;;  %v754_v23 = vld [vmem:[#allocation2 + $0x18] sm:$0xf] }
  0xf5   : > { %3408 = vmatpush3.bf16.msra.mxu0 %v4565_v2  ;;  %3419 = vmatprep.mubr.msk.bf16.mxu0 %vm4198_vm3, %v4197_v20 }
  0xf6   : > { %3409 = vmatprep.subr.bf16.mxu0 %v4197_v20 }
  0xf9   : > { %3410 = vmatpush3.bf16.msra.mxu0 %v4569_v3 }
  0xfa   : > { %3411 = vmatprep.subr.bf16.mxu0 %v4197_v20 }
  0xfd   : > { %3412 = vmatpush3.bf16.msra.mxu0 %v3846_v8 }
  0xfe   : > { %3413 = vmatprep.subr.bf16.mxu0 %v4197_v20 }
 0x101   : > { %3414 = vmatpush3.bf16.msra.mxu0 %v3847_v11 }
 0x102   : > { %3415 = vmatprep.subr.bf16.mxu0 %v4197_v20 }
 0x105   : > { %3416 = vmatpush3.bf16.msra.mxu0 %v3848_v12 }
 0x106   : > { %3417 = vmatprep.subr.bf16.mxu0 %v4197_v20 }
 0x109   : > { %3418 = vmatpush3.bf16.msra.mxu0 %v3849_v13 }
 0x10a   : > { %3423 = vmatprep.subr.bf16.mxu0 %v4197_v20 }
 0x10c   : > { %3420 = vmatmul.mubr.bf16.vlgmr.msra.gmra.mrb[8].mxu0 %v777_v26 }
 0x10d   : > { %3424 = vmatpush3.bf16.msra.mxu0 %v4558_v0  ;;  %3439 = vmatprep.mubr.msk.bf16.mxu0 %vm4198_vm3, %v4197_v20 }
 0x10e   : > { %3425 = vmatprep.subr.bf16.mxu0 %v4197_v20 }
 0x111   : > { %3426 = vmatpush3.bf16.msra.mxu0 %v4560_v1 }
 0x112   : > { %3427 = vmatprep.subr.bf16.mxu0 %v4197_v20 }
 0x115   : > { %3428 = vmatpush3.bf16.msra.mxu0 %v4565_v2 }
 0x116   : > { %3429 = vmatprep.subr.bf16.mxu0 %v4197_v20 }
 0x119   : > { %3430 = vmatpush3.bf16.msra.mxu0 %v4569_v3 }
 0x11a   : > { %3431 = vmatprep.subr.bf16.mxu0 %v4197_v20 }
 0x11d   : > { %3432 = vmatpush3.bf16.msra.mxu0 %v3846_v8 }
 0x11e   : > { %3433 = vmatprep.subr.bf16.mxu0 %v4197_v20 }
 0x121   : > { %3434 = vmatpush3.bf16.msra.mxu0 %v3847_v11 }
 0x122   : > { %3435 = vmatprep.subr.bf16.mxu0 %v4197_v20 }
 0x125   : > { %3436 = vmatpush3.bf16.msra.mxu0 %v3848_v12 }
 0x126   : > { %3437 = vmatprep.subr.bf16.mxu0 %v4197_v20 }
 0x129   : > { %3438 = vmatpush3.bf16.msra.mxu0 %v3849_v13 }
 0x12c   : > { %3440 = vmatmul.mubr.bf16.vlgmr.msra.gmra.mrb[12].mxu0 %v858_v29 }
 0x1bf   : > { %v3397_v54 = vpop.f32.mrb[0].mxu0 }
 0x1c0   : > { %v600_v55 = vadd.f32 %v3397_v54, %v4659_v53  ;;  %v591_v56 = vpop.f32.mrb[1].mxu0  ;;  %v751_v54 = vld [vmem:[#allocation2 + $0x14] sm:$0x1] }
 0x1c1   : > { %v592_v57 = vadd.f32 %v4659_v53, %v591_v56  ;;  %v3398_v58 = vpop.f32.mrb[2].mxu0 }
 0x1c2   : > { %v624_v59 = vmul.f32 0.1, %v600_v55  ;;  %v603_v60 = vadd.f32 %v3398_v58, %v4659_v53  ;;  %v594_v61 = vpop.f32.mrb[3].mxu0 }
 0x1c3   : > { %v622_v62 = vmul.f32 0.1, %v592_v57  ;;  %v595_v63 = vadd.f32 %v4659_v53, %v594_v61 }
 0x1c4   : > { %v632_v0 = vmax.f32 %v600_v55, %v624_v59  ;;  %v625_v1 = vmul.f32 0.1, %v603_v60 }
 0x1c5   : > { %v630_v2 = vmax.f32 %v592_v57, %v622_v62  ;;  %v623_v3 = vmul.f32 0.1, %v595_v63 }
 0x1c6   : > { %v3230_v6 = vpack.c.bf16 %v632_v0, %v632_v0  ;;  %v633_v8 = vmax.f32 %v603_v60, %v625_v1 }
 0x1c7   : > { %v3228_v9 = vpack.c.bf16 %v630_v2, %v630_v2  ;;  %v631_v10 = vmax.f32 %v595_v63, %v623_v3  ;;  %v3401_v11 = vpop.f32.mrb[4].mxu0 }
 0x1c8   : > { %v682_v12 = vshrl.u32 %v3230_v6, 16  ;;  %v685_v13 = vshll.u32 %v3230_v6, 16  ;;  %v3231_v18 = vpack.c.bf16 %v633_v8, %v633_v8  ;;  %v616_v19 = vadd.f32 %v3401_v11, %v4659_v53  ;;  %v607_v20 = vpop.f32.mrb[5].mxu0 }
 0x1c9   : > { %v665_v24 = vshrl.u32 %v3228_v9, 16  ;;  %v668_v25 = vshll.u32 %v3228_v9, 16  ;;  %v3229_v26 = vpack.c.bf16 %v631_v10, %v631_v10  ;;  %v608_v27 = vadd.f32 %v4659_v53, %v607_v20  ;;  %v3402_v28 = vpop.f32.mrb[6].mxu0  ;;  %v768_v10 = vld [vmem:[#allocation2 + $0x30] sm:$0xf] }
 0x1ca   : > { %v684_v29 = vrot.slane %v682_v12, 7  ;;  %v690_v30 = vshrl.u32 %v3231_v18, 16  ;;  %v693_v31 = vshll.u32 %v3231_v18, 16  ;;  %v628_v32 = vmul.f32 0.1, %v616_v19  ;;  %v610_v33 = vpop.f32.mrb[7].mxu0 }
 0x1cb   : > { %v667_v35 = vrot.slane %v665_v24, 7  ;;  %v673_v36 = vshrl.u32 %v3229_v26, 16  ;;  %v676_v37 = vshll.u32 %v3229_v26, 16  ;;  %v626_v38 = vmul.f32 0.1, %v608_v27 }
 0x1cc   : > { %v687_v39 = vor.u32 %v685_v13, %v684_v29  ;;  %v688_v40 = vrot.slane %v684_v29, 4  ;;  %v692_v42 = vrot.slane %v690_v30, 7  ;;  %v636_v43 = vmax.f32 %v616_v19, %v628_v32  ;;  %v761_v13 = vld [vmem:[#allocation2 + $0x24] sm:$0xf] }
 0x1cd   : > { %v670_v44 = vor.u32 %v668_v25, %v667_v35  ;;  %v671_v45 = vrot.slane %v667_v35, 4  ;;  %v675_v48 = vrot.slane %v673_v36, 7  ;;  %v634_v49 = vmax.f32 %v608_v27, %v626_v38  ;;  %v772_v38 = vld [vmem:[#allocation2 + $0x38] sm:$0x1] }
 0x1ce   : > { %v755_v50 = vsel %vm4669_vm8, %v687_v39, %v754_v23  ;;  %v695_v51 = vor.u32 %v693_v31, %v692_v42  ;;  %v697_v52 = vrot.slane %v692_v42, 4  ;;  %v3234_v55 = vpack.c.bf16 %v636_v43, %v636_v43  ;;  %v765_v39 = vld [vmem:[#allocation2 + $0x2c] sm:$0x1] }
 0x1cf   : > { %756 = vst [vmem:[#allocation2 + $0x18] sm:$0xf] %v755_v50  ;;  %v748_v56 = vsel %vm4669_vm8, %v670_v44, %v747_v41  ;;  %v678_v57 = vor.u32 %v676_v37, %v675_v48  ;;  %v680_v58 = vrot.slane %v675_v48, 4  ;;  %v3232_v59 = vpack.c.bf16 %v634_v49, %v634_v49 }
 0x1d0   : > { %749 = vst [vmem:[#allocation2 + $0xc] sm:$0xf] %v748_v56  ;;  %v696_v60 = vsel %vm4675_vm9, %v688_v40, %v695_v51  ;;  %v759_v61 = vsel %vm4581_vm2, %v697_v52, %v758_v47  ;;  %v716_v62 = vshrl.u32 %v3234_v55, 16  ;;  %v719_v63 = vshll.u32 %v3234_v55, 16 }
 0x1d1   : > { %757 = vst [vmem:[#allocation2 + $0x1c] sm:$0xf] %v696_v60  ;;  %760 = vst [vmem:[#allocation2 + $0x20] sm:$0x1] %v759_v61  ;;  %v679_v0 = vsel %vm4675_vm9, %v671_v45, %v678_v57  ;;  %v752_v1 = vsel %vm4581_vm2, %v680_v58, %v751_v54  ;;  %v699_v2 = vshrl.u32 %v3232_v59, 16  ;;  %v702_v3 = vshll.u32 %v3232_v59, 16 }
 0x1d2   : > { %750 = vst [vmem:[#allocation2 + $0x10] sm:$0xf] %v679_v0  ;;  %753 = vst [vmem:[#allocation2 + $0x14] sm:$0x1] %v752_v1  ;;  %v718_v6 = vrot.slane %v716_v62, 7  ;;  %v619_v8 = vadd.f32 %v3402_v28, %v4659_v53  ;;  %v611_v9 = vadd.f32 %v4659_v53, %v610_v33 }
 0x1d3   : > { %v701_v11 = vrot.slane %v699_v2, 7  ;;  %v849_v2 = vld [vmem:[#allocation2] sm:$0xf] }
 0x1d4   : > { %v721_v12 = vor.u32 %v719_v63, %v718_v6  ;;  %v629_v18 = vmul.f32 0.1, %v619_v8  ;;  %v627_v19 = vmul.f32 0.1, %v611_v9  ;;  %v722_v33 = vrot.slane %v718_v6, 4 }
 0x1d5   : > { %v704_v20 = vor.u32 %v702_v3, %v701_v11  ;;  %v705_v35 = vrot.slane %v701_v11, 4 }
 0x1d6   : > { %v769_v23 = vsel %vm4669_vm8, %v721_v12, %v768_v10  ;;  %v637_v24 = vmax.f32 %v619_v8, %v629_v18  ;;  %v635_v25 = vmax.f32 %v611_v9, %v627_v19  ;;  %v853_v9 = vld [vmem:[#allocation2 + $0x8] sm:$0x1] }
 0x1d7   : > { %770 = vst [vmem:[#allocation2 + $0x30] sm:$0xf] %v769_v23  ;;  %v762_v26 = vsel %vm4669_vm8, %v704_v20, %v761_v13 }
 0x1d8   : > { %763 = vst [vmem:[#allocation2 + $0x24] sm:$0xf] %v762_v26  ;;  %v3235_v27 = vpack.c.bf16 %v637_v24, %v637_v24  ;;  %v3233_v28 = vpack.c.bf16 %v635_v25, %v635_v25 }
 0x1da   : > { %v724_v29 = vshrl.u32 %v3235_v27, 16  ;;  %v727_v30 = vshll.u32 %v3235_v27, 16  ;;  %v707_v31 = vshrl.u32 %v3233_v28, 16  ;;  %v710_v32 = vshll.u32 %v3233_v28, 16 }
 0x1dc   : > { %v726_v36 = vrot.slane %v724_v29, 7  ;;  %v709_v37 = vrot.slane %v707_v31, 7 }
 0x1de   : > { %v729_v40 = vor.u32 %v727_v30, %v726_v36  ;;  %v731_v41 = vrot.slane %v726_v36, 4  ;;  %v712_v42 = vor.u32 %v710_v32, %v709_v37  ;;  %v714_v43 = vrot.slane %v709_v37, 4 }
 0x1df   : > { %v812_v44 = vpop.f32.mrb[8].mxu0 }
 0x1e0   : > { %v730_v45 = vsel %vm4675_vm9, %v722_v33, %v729_v40  ;;  %v773_v47 = vsel %vm4581_vm2, %v731_v41, %v772_v38  ;;  %v713_v48 = vsel %vm4675_vm9, %v705_v35, %v712_v42  ;;  %v766_v49 = vsel %vm4581_vm2, %v714_v43, %v765_v39  ;;  %v3421_v50 = vpop.f32.mrb[9].mxu0  ;;  %v931_v39 = vld [vmem:[#allocation2 + $0x3c] sm:$0xf]  ;;  %v935_v43 = vld [vmem:[#allocation2 + $0x44] sm:$0x1] }
 0x1e1   : > { %771 = vst [vmem:[#allocation2 + $0x34] sm:$0xf] %v730_v45  ;;  %774 = vst [vmem:[#allocation2 + $0x38] sm:$0x1] %v773_v47  ;;  %v813_v51 = vadd.f32 %v4659_v53, %v812_v44  ;;  %v815_v52 = vpop.f32.mrb[10].mxu0 }
 0x1e2   : > { %764 = vst [vmem:[#allocation2 + $0x28] sm:$0xf] %v713_v48  ;;  %767 = vst [vmem:[#allocation2 + $0x2c] sm:$0x1] %v766_v49  ;;  %v816_v54 = vadd.f32 %v4659_v53, %v815_v52  ;;  %v3422_v55 = vpop.f32.mrb[11].mxu0 }
 0x1e3   : > { %v819_v56 = vmul.f32 0.1, %v813_v51 }
 0x1e4   : > { %v820_v57 = vmul.f32 0.1, %v816_v54 }
 0x1e5   : > { %v821_v58 = vmax.f32 %v813_v51, %v819_v56 }
 0x1e6   : > { %v822_v59 = vmax.f32 %v816_v54, %v820_v57  ;;  %v4199_v54 = vmov (!%p3097_p11), 0  }
 0x1e7   : > { %v3236_v60 = vpack.c.bf16 %v821_v58, %v821_v58 }
 0x1e8   : > { %v3237_v61 = vpack.c.bf16 %v822_v59, %v822_v59 }
 0x1e9   : > { %v830_v62 = vshrl.u32 %v3236_v60, 16  ;;  %v833_v1 = vshll.u32 %v3236_v60, 16 }
 0x1ea   : > { %v838_v63 = vshrl.u32 %v3237_v61, 16  ;;  %v841_v6 = vshll.u32 %v3237_v61, 16 }
 0x1eb   : > { %v832_v0 = vrot.slane %v830_v62, 7 }
 0x1ec   : > { %v840_v3 = vrot.slane %v838_v63, 7 }
 0x1ed   : > { %v835_v8 = vor.u32 %v833_v1, %v832_v0  ;;  %v836_v10 = vrot.slane %v832_v0, 4 }
 0x1ee   : > { %v843_v11 = vor.u32 %v841_v6, %v840_v3  ;;  %v845_v12 = vrot.slane %v840_v3, 4 }
 0x1ef   : > { %v850_v13 = vsel %vm4669_vm8, %v835_v8, %v849_v2 }
 0x1f0   : > { %851 = vst [vmem:[#allocation2] sm:$0xf] %v850_v13  ;;  %v844_v18 = vsel %vm4675_vm9, %v836_v10, %v843_v11  ;;  %v854_v19 = vsel %vm4581_vm2, %v845_v12, %v853_v9 }
 0x1f1   : > { %852 = vst [vmem:[#allocation2 + $0x4] sm:$0xf] %v844_v18  ;;  %855 = vst [vmem:[#allocation2 + $0x8] sm:$0x1] %v854_v19 }
 0x1f2   : > { %945 = vst [vmem:[#allocation2 + $0x4] sm:$0xf] (!%p3097_p11), %v4199_v54 }
 0x1f7   : > { %v942_v50 = vld [vmem:[#allocation2] sm:$0xf] (!%p3097_p11) }
 0x1f8   : > { %v946_v51 = vld [vmem:[#allocation2 + $0x8] sm:$0x1] (!%p3097_p11)  ;;  %v943_v52 = vsel (!%p3097_p11), %vm4669_vm8, 0, %v942_v50 }
 0x1f9   : > { %v947_v46 = vsel (!%p3097_p11), %vm4581_vm2, 0, %v946_v51  ;;  %944 = vst [vmem:[#allocation2] sm:$0xf] (!%p3097_p11), %v943_v52 }
 0x1fa   : > { %948 = vst [vmem:[#allocation2 + $0x8] sm:$0x1] (!%p3097_p11), %v947_v46 }
 0x1ff   : > { %v893_v20 = vpop.f32.mrb[12].mxu0 }
 0x200   : > { %v894_v23 = vadd.f32 %v4659_v53, %v893_v20  ;;  %v3441_v24 = vpop.f32.mrb[13].mxu0 }
 0x201   : > { %v896_v25 = vpop.f32.mrb[14].mxu0 }
 0x202   : > { %v900_v26 = vmul.f32 0.1, %v894_v23  ;;  %v897_v27 = vadd.f32 %v4659_v53, %v896_v25  ;;  %v3442_v28 = vpop.f32.mrb[15].mxu0 }
 0x204   : > { %v902_v29 = vmax.f32 %v894_v23, %v900_v26  ;;  %v901_v30 = vmul.f32 0.1, %v897_v27 }
 0x206   : > { %v3238_v31 = vpack.c.bf16 %v902_v29, %v902_v29  ;;  %v903_v32 = vmax.f32 %v897_v27, %v901_v30 }
 0x208   : > { %v911_v33 = vshrl.u32 %v3238_v31, 16  ;;  %v3239_v35 = vpack.c.bf16 %v903_v32, %v903_v32  ;;  %v914_v37 = vshll.u32 %v3238_v31, 16 }
 0x20a   : > { %v913_v36 = vrot.slane %v911_v33, 7  ;;  %v919_v38 = vshrl.u32 %v3239_v35, 16  ;;  %v922_v42 = vshll.u32 %v3239_v35, 16 }
 0x20b   : > { %941 = sbr.rel (%p3097_p11) target bundleno = 530 (0x212), region = 72 }
 0x20c   : > { %v916_v40 = vor.u32 %v914_v37, %v913_v36  ;;  %v921_v41 = vrot.slane %v919_v38, 7  ;;  %v917_v44 = vrot.slane %v913_v36, 4 }
 0x20e   : > { %v932_v53 = vsel %vm4669_vm8, %v916_v40, %v931_v39  ;;  %v924_v45 = vor.u32 %v922_v42, %v921_v41  ;;  %v926_v47 = vrot.slane %v921_v41, 4 }
 0x20f   : > { %933 = vst [vmem:[#allocation2 + $0x3c] sm:$0xf] %v932_v53 }
 0x210   : > { %v925_v48 = vsel %vm4675_vm9, %v917_v44, %v924_v45  ;;  %v936_v49 = vsel %vm4581_vm2, %v926_v47, %v935_v43 }
 0x211   : > { %934 = vst [vmem:[#allocation2 + $0x40] sm:$0xf] %v925_v48  ;;  %937 = vst [vmem:[#allocation2 + $0x44] sm:$0x1] %v936_v49 }
 0x212 PF: > { %s5155_s8 = sld [smem:[#allocation19_spill]] }
 0x218   : > { %p3098_p13 = scmp.ne.s32.totalorder %s5155_s8, 3 }
 0x219   : > { %v953_v55 = vld [vmem:[#allocation2 + $0x3c] sm:$0xf] (!%p3098_p13)  ;;  %v957_v56 = vld [vmem:[#allocation2 + $0x44] sm:$0x1] (!%p3098_p13)  ;;  %v4200_v58 = vmov (!%p3098_p13), 0  }
 0x21a   : > { %952 = sbr.rel (%p3098_p13) target bundleno = 545 (0x221), region = 76  ;;  %v954_v57 = vsel (!%p3098_p13), %vm4669_vm8, 0, %v953_v55  ;;  %956 = vst [vmem:[#allocation2 + $0x40] sm:$0xf] (!%p3098_p13), %v4200_v58  ;;  %v958_v59 = vsel (!%p3098_p13), %vm4581_vm2, 0, %v957_v56 }
 0x21b   : > { %955 = vst [vmem:[#allocation2 + $0x3c] sm:$0xf] (!%p3098_p13), %v954_v57  ;;  %959 = vst [vmem:[#allocation2 + $0x44] sm:$0x1] (!%p3098_p13), %v958_v59 }
 0x221 PF: > { %v3850_v60 = vld [vmem:[#allocation11 + $0xc0] sm:$0xff]   ;;  %v3851_v61 = vld [vmem:[#allocation11 + $0xc8] sm:$0xff]   ;;  %v3852_v62 = vld [vmem:[#allocation11 + $0xd0] sm:$0xff]   ;;  %vm988_vm10 = vsmask.f32 3328  ;;  %vm1382_vm13 = vcmask 1042432  }
 0x222   : > { %3515 = vmatprep.subr.bf16.mxu1 %v3850_v60  ;;  %v3853_v63 = vld [vmem:[#allocation11 + $0xd8] sm:$0xff]   ;;  %v3858_v0 = vld [vmem:[#allocation11 + $0x40] sm:$0xff]   ;;  %v3862_v7 = vld [vmem:[#allocation11 + $0x48] sm:$0xff]   ;;  %vm989_vm11 = vsmask.f32 7440  ;;  %vm1383_vm14 = vcmask 1046532  }
 0x223   : > { %3516 = vmatpush3.bf16.msra.mxu1 %v3850_v60  ;;  %v3859_v34 = vld [vmem:[#allocation2 + $0xc] sm:$0xff]   ;;  %3443 = vmatprep.subr.bf16.mxu0 %v3858_v0  ;;  %v3864_v2 = vld [vmem:[#allocation11 + $0x50] sm:$0xff]   ;;  %v3866_v6 = vld [vmem:[#allocation11 + $0x58] sm:$0xff]   ;;  %s5160_s26 = sld [smem:[#allocation31_spill]]  ;;  %s5161_s27 = sld [smem:[#allocation19_spill]] }
 0x224   : > { %3517 = vmatprep.subr.bf16.mxu1 %v3851_v61  ;;  %v3854_v1 = vld [vmem:[#allocation11 + $0xe0] sm:$0xff]   ;;  %3444 = vmatpush3.bf16.msra.mxu0 %v3858_v0  ;;  %v3855_v3 = vld [vmem:[#allocation11 + $0xe8] sm:$0xff]   ;;  %v3856_v8 = vld [vmem:[#allocation11 + $0xf0] sm:$0xff]   ;;  %s5162_s9 = sld [smem:[#allocation20_spill]]  ;;  %s2892_s23 = sshll.u32 %s4723_s3, 4  ;;  %s5014_s23 = int_to_ptr.vmem [resolvable:$true] %s2892_s23 }
 0x225   : > { %3531 = vmatprep.mubr.bf16.mxu1 %v3859_v34  ;;  %3445 = vmatprep.subr.bf16.mxu0 %v3862_v7  ;;  %v3868_v9 = vld [vmem:[#allocation11 + $0x60] sm:$0xff]   ;;  %v3857_v10 = vld [vmem:[#allocation11 + $0xf8] sm:$0xff]   ;;  %v3870_v11 = vld [vmem:[#allocation11 + $0x68] sm:$0xff]   ;;  %s5163_s12 = sld [smem:[#allocation23_spill]]  ;;  %s5164_s16 = sld [smem:[#allocation32_spill]] }
 0x226   : > { %v3860_v12 = vld [vmem:[#allocation11 + $0x100] sm:$0xff]   ;;  %v3872_v13 = vld [vmem:[#allocation11 + $0x70] sm:$0xff]   ;;  %v4735_v18 = vld [vmem:[#allocation2] sm:$0xf]  ;;  %s2876_s15 = scalar_lea.sflag [#allocation5], %s4532_s14  ;;  %s4080_s6 = scalar_lea.vmem %s5014_s23, 1024 }
 0x227   : > { %3518 = vmatpush3.bf16.msra.mxu1 %v3851_v61  ;;  %v4737_v19 = vld [vmem:[#allocation2 + $0x4] sm:$0xf]  ;;  %v4739_v20 = vld [vmem:[#allocation2 + $0x8] sm:$0x1]  ;;  %v3861_v23 = vld [vmem:[#allocation2 + $0x18] sm:$0xff]   ;;  %v992_v24 = vshrl.u32 %v4735_v18, 16  ;;  %p4081_p0 = scmp.ne.s32.totalorder %s5014_s23, %s4080_s6 }
 0x228   : > { %3519 = vmatprep.subr.bf16.mxu1 %v3852_v62  ;;  %3446 = vmatpush3.bf16.msra.mxu0 %v3862_v7  ;;  %v995_v25 = vshll.u32 %v4735_v18, 16  ;;  %v3863_v26 = vld [vmem:[#allocation11 + $0x108] sm:$0xff]   ;;  %v3873_v27 = vld [vmem:[#allocation2 + $0x24] sm:$0xff]   ;;  %v1001_v28 = vshll.u32 %v4737_v19, 16  ;;  %v1005_v29 = vshrl.u32 %v4737_v19, 16  ;;  %v1011_v30 = vshll.u32 %v4739_v20, 16  ;;  %vm4756_vm12 = vmor %vm988_vm10, %vm989_vm11 }
 0x229   : > { %3447 = vmatprep.subr.bf16.mxu0 %v3864_v2  ;;  %v994_v31 = vrot.slane %v992_v24, 4  ;;  %v3876_v33 = vld [vmem:[#allocation11 + $0x78] sm:$0xff]   ;;  %v4746_v38 = vld [vmem:[#allocation2 + $0xc] sm:$0xf]  ;;  %v4748_v40 = vld [vmem:[#allocation2 + $0x10] sm:$0xf] }
 0x22a   : > { %v997_v32 = vrot.slane %v995_v25, 5  ;;  %v1003_v35 = vrot.slane %v1001_v28, 5  ;;  %v1007_v36 = vrot.slane %v1005_v29, 4  ;;  %v1013_v37 = vrot.slane %v1011_v30, 5  ;;  %v4750_v41 = vld [vmem:[#allocation2 + $0x14] sm:$0x1]  ;;  %vm4855_vm15 = vmor %vm1382_vm13, %vm1383_vm14 }
 0x22b   : > { %3520 = vmatpush3.bf16.msra.mxu1 %v3852_v62  ;;  %v1016_v42 = vshrl.u32 %v4746_v38, 16  ;;  %v1019_v43 = vshll.u32 %v4746_v38, 16  ;;  %v3865_v44 = vld [vmem:[#allocation11 + $0x110] sm:$0xff]   ;;  %v1025_v47 = vshll.u32 %v4748_v40, 16  ;;  %v1029_v48 = vshrl.u32 %v4748_v40, 16  ;;  %v3878_v52 = vld [vmem:[#allocation11] sm:$0xff]  }
 0x22c   : > { %3521 = vmatprep.subr.bf16.mxu1 %v3853_v63  ;;  %3448 = vmatpush3.bf16.msra.mxu0 %v3864_v2  ;;  %v998_v39 = vor.u32 %v997_v32, %v994_v31  ;;  %v1008_v45 = vor.u32 %v1007_v36, %v1003_v35  ;;  %v1035_v49 = vshll.u32 %v4750_v41, 16  ;;  %v1737_v50 = vld [vmem:[#allocation2 + $0xc] sm:$0xf]  ;;  %v4763_v55 = vld [vmem:[#allocation2 + $0x10] sm:$0xf]  ;;  %s3240_s22 = sshll.u32 %s5161_s27, 3 }
 0x22d   : > { %3449 = vmatprep.subr.bf16.mxu0 %v3866_v6  ;;  %v1018_v54 = vrot.slane %v1016_v42, 4  ;;  %v1021_v46 = vrot.slane %v1019_v43, 5  ;;  %v3875_v56 = vld [vmem:[#allocation2 + $0x30] sm:$0xff]   ;;  %v1027_v58 = vrot.slane %v1025_v47, 5  ;;  %v1031_v59 = vrot.slane %v1029_v48, 4  ;;  %v3869_v32 = vld [vmem:[#allocation11 + $0x120] sm:$0xff]  }
 0x22e   : > { %v999_v51 = vrot.slane %v998_v39, 4  ;;  %v1009_v57 = vrot.slane %v1008_v45, 4  ;;  %v1037_v60 = vrot.slane %v1035_v49, 5  ;;  %v4765_v61 = vld [vmem:[#allocation2 + $0x14] sm:$0x1]  ;;  %v1750_v0 = vshrl.u32 %v1737_v50, 16 }
 0x22f   : > { %3522 = vmatpush3.bf16.msra.mxu1 %v3853_v63  ;;  %v1022_v63 = vor.u32 %v1021_v46, %v1018_v54  ;;  %v1753_v34 = vshll.u32 %v1737_v50, 16  ;;  %v1032_v7 = vor.u32 %v1031_v59, %v1027_v58  ;;  %v1759_v2 = vshll.u32 %v4763_v55, 16  ;;  %v3880_v47 = vld [vmem:[#allocation11 + $0x8] sm:$0xff]   ;;  %s3223_s21 = sshll.u32 %s5162_s9, 5  ;;  %p5165_p8 = scmp.ne.s32.totalorder %s5163_s12, 0 }
 0x230   : > { %3523 = vmatprep.subr.bf16.mxu1 %v3854_v1  ;;  %3450 = vmatpush3.bf16.msra.mxu0 %v3866_v6  ;;  %v1004_v62 = vsel %vm4756_vm12, %v999_v51, %v1003_v35  ;;  %v1740_v6 = vld [vmem:[#allocation2 + $0x18] sm:$0xf]  ;;  %v1769_v28 = vshll.u32 %v4765_v61, 16  ;;  %v3931_v53 = vld [vmem:[#allocation11 + $0x228] sm:$0xff]   ;;  %s2889_s1 = sadd.s32 %s3240_s22, %s3223_s21  ;;  %s4201_s7 = smov [#allocation12]  }
 0x231   : > { %3451 = vmatprep.subr.bf16.mxu0 %v3868_v9  ;;  %v1033_v24 = vrot.slane %v1032_v7, 4  ;;  %v1761_v25 = vrot.slane %v1759_v2, 5  ;;  %v1774_v30 = vshrl.u32 %v1740_v6, 16  ;;  %v1777_v31 = vshll.u32 %v1740_v6, 16  ;;  %v4793_v7 = vld [vmem:[#allocation2 + $0x1c] sm:$0xf]  ;;  %p4082_p2 = pnand %p4081_p0, %p5165_p8 }
 0x232   : > { %v1771_v36 = vrot.slane %v1769_v28, 5  ;;  %v3874_v2 = vld [vmem:[#allocation11 + $0x130] sm:$0xff]   ;;  %v4797_v6 = vld [vmem:[#allocation2 + $0x20] sm:$0x1]  ;;  %s3224_s28 = sshll.u32 %s2889_s1, 7  ;;  %s4084_s13 = sshll.u32 %s4201_s7, 4  ;;  %s4085_s13 = int_to_ptr.vmem [resolvable:$false] %s4084_s13 }
 0x233   : > { %3524 = vmatpush3.bf16.msra.mxu1 %v3854_v1  ;;  %v1014_v1 = vsel %vm4756_vm12, %v1009_v57, %v1013_v37  ;;  %v1776_v43 = vrot.slane %v1774_v30, 4  ;;  %v1779_v45 = vrot.slane %v1777_v31, 5  ;;  %v4808_v31 = vld [vmem:[#allocation2 + $0x28] sm:$0xf]  ;;  %s5012_s24 = scalar_lea.hbm %s5164_s16, %s3224_s28  ;;  %p4083_p3 = pneg %p4082_p2 }
 0x234   : > { %3525 = vmatprep.subr.bf16.mxu1 %v3855_v3  ;;  %3452 = vmatpush3.bf16.msra.mxu0 %v3868_v9  ;;  %v3867_v9 = vld [vmem:[#allocation11 + $0x118] sm:$0xff]   ;;  %s4086_s18 = scalar_lea.vmem %s4085_s13, 2048  ;;  %p4087_p5 = scmp.lt.s32.totalorder %s5014_s23, %s4085_s13 }
 0x235   : > { %3453 = vmatprep.subr.bf16.mxu0 %v3870_v11  ;;  %v1780_v46 = vor.u32 %v1779_v45, %v1776_v43  ;;  %v1073_v43 = vshll.u32 %v4808_v31, 16  ;;  %v1743_v45 = vld [vmem:[#allocation2 + $0x24] sm:$0xf]  ;;  %p4088_p7 = scmp.lt.s32.totalorder %s4086_s18, %s4080_s6 }
 0x237   : > { %3526 = vmatpush3.bf16.msra.mxu1 %v3855_v3  ;;  %v1763_v3 = vshrl.u32 %v4763_v55, 16  ;;  %p4089_p12 = por %p4088_p7, %p4087_p5 }
 0x238   : > { %3527 = vmatprep.subr.bf16.mxu1 %v3856_v8  ;;  %3454 = vmatpush3.bf16.msra.mxu0 %v3870_v11  ;;  %v1023_v11 = vrot.slane %v1022_v63, 4 }
 0x239   : > { %3455 = vmatprep.subr.bf16.mxu0 %v3872_v13  ;;  %p4090_p1 = pnand %p4089_p12, %p4083_p3 }
 0x23a   : > { %v1028_v29 = vsel %vm4756_vm12, %v1023_v11, %v1027_v58  ;;  %v3882_v58 = vld [vmem:[#allocation11 + $0x10] sm:$0xff]   ;;  %v1049_v11 = vshll.u32 %v4793_v7, 16 }
 0x23b   : > { %3528 = vmatpush3.bf16.msra.mxu1 %v3856_v8  ;;  %v4773_v8 = vld [vmem:[#allocation2 + $0x1c] sm:$0xf] }
 0x23c   : > { %3529 = vmatprep.subr.bf16.mxu1 %v3857_v10  ;;  %3456 = vmatpush3.bf16.msra.mxu0 %v3872_v13  ;;  %v1755_v13 = vrot.slane %v1753_v34, 5  ;;  %v1783_v37 = vshll.u32 %v4773_v8, 16  ;;  %v1787_v50 = vshrl.u32 %v4773_v8, 16  ;;  %v1051_v28 = vrot.slane %v1049_v11, 5 }
 0x23d   : > { %3457 = vmatprep.subr.bf16.mxu0 %v3876_v33 }
 0x23e   : > { %v1785_v49 = vrot.slane %v1783_v37, 5  ;;  %v1789_v57 = vrot.slane %v1787_v50, 4  ;;  %v1077_v50 = vshrl.u32 %v4808_v31, 16 }
 0x23f   : > { %3530 = vmatpush3.bf16.msra.mxu1 %v3857_v10  ;;  %v3099_v10 = vcombine.low %v1004_v62, %v1014_v1  ;;  %v4791_v1 = vld [vmem:[#allocation2 + $0x18] sm:$0xf] }
 0x240   : > { %3539 = vmatprep.subr.bf16.mxu1 %v3860_v12  ;;  %3458 = vmatpush3.bf16.msra.mxu0 %v3876_v33  ;;  %v1038_v33 = vsel %vm4756_vm12, %v1033_v24, %v1037_v60  ;;  %v1781_v60 = vrot.slane %v1780_v46, 4  ;;  %v1790_v63 = vor.u32 %v1789_v57, %v1785_v49  ;;  %v3886_v24 = vld [vmem:[#allocation11 + $0x20] sm:$0xff]  }
 0x241   : > { %3467 = vmatprep.subr.bf16.mxu0 %v3878_v52  ;;  %3459 = vmatprep.mubr.bf16.mxu0 %v3099_v10  ;;  %v3100_v39 = vcombine.low %v1028_v29, %v1038_v33  ;;  %v1043_v10 = vshll.u32 %v4791_v1, 16  ;;  %v4804_v29 = vld [vmem:[#allocation2 + $0x24] sm:$0xf]  ;;  %v3111_v33 = vcombine.low %v4735_v18, %v4737_v19  ;;  %v3879_v46 = vld [vmem:[#allocation11 + $0x140] sm:$0xff]  }
 0x242   : > { %3532 = vmatmul.mubr.bf16.vlgmr.msra.gmra.mrb[0].mxu1 %v3861_v23  ;;  %v4775_v23 = vld [vmem:[#allocation2 + $0x20] sm:$0x1]  ;;  %v1786_v34 = vsel %vm4756_vm12, %v1781_v60, %v1785_v49  ;;  %v1079_v60 = vrot.slane %v1077_v50, 4 }
 0x243   : > { %3540 = vmatpush3.bf16.msra.mxu1 %v3860_v12  ;;  %3535 = vmatprep.mubr.bf16.mxu1 %v3873_v27  ;;  %v1752_v12 = vrot.slane %v1750_v0, 4  ;;  %v1765_v27 = vrot.slane %v1763_v3, 4  ;;  %v1793_v51 = vshll.u32 %v4775_v23, 16  ;;  %v1791_v0 = vrot.slane %v1790_v63, 4 }
 0x244   : > { %3541 = vmatprep.subr.bf16.mxu1 %v3863_v26  ;;  %3460 = vmatmul.mubr.bf16.vlgmr.msra.gmra.mrb[16].mxu0 %v3100_v39  ;;  %v1064_v39 = vshrl.u32 %v4804_v29, 16  ;;  %v1798_v63 = vshrl.u32 %v1743_v45, 16 }
 0x245   : > { %v1766_v35 = vor.u32 %v1765_v27, %v1761_v25  ;;  %3468 = vmatpush3.bf16.msra.mxu0 %v3878_v52  ;;  %v1795_v62 = vrot.slane %v1793_v51, 5  ;;  %v3884_v52 = vld [vmem:[#allocation11 + $0x18] sm:$0xff]   ;;  %v1045_v27 = vrot.slane %v1043_v10, 5  ;;  %v1746_v10 = vld [vmem:[#allocation2 + $0x30] sm:$0xf] }
 0x246   : > { %3469 = vmatprep.subr.bf16.mxu0 %v3880_v47  ;;  %v1822_v50 = vshrl.u32 %v1746_v10, 16 }
 0x247   : > { %3542 = vmatpush3.bf16.msra.mxu1 %v3863_v26  ;;  %v1756_v26 = vor.u32 %v1755_v13, %v1752_v12  ;;  %v1767_v48 = vrot.slane %v1766_v35, 4  ;;  %v1796_v3 = vsel %vm4756_vm12, %v1791_v0, %v1795_v62  ;;  %v1053_v12 = vshrl.u32 %v4793_v7, 16 }
 0x248   : > { %3543 = vmatprep.subr.bf16.mxu1 %v3865_v44  ;;  %v1059_v13 = vshll.u32 %v4797_v6, 16  ;;  %v2017_v35 = vrot.slane %v4763_v55, 5 }
 0x249   : > { %v1757_v42 = vrot.slane %v1756_v26, 4  ;;  %3470 = vmatpush3.bf16.msra.mxu0 %v3880_v47  ;;  %v4806_v26 = vcombine.low %v1786_v34, %v1796_v3  ;;  %v1055_v30 = vrot.slane %v1053_v12, 4  ;;  %v3888_v47 = vld [vmem:[#allocation11 + $0x28] sm:$0xff]   ;;  %v4824_v3 = vld [vmem:[#allocation2 + $0x2c] sm:$0x1]  ;;  %v1800_v12 = vrot.slane %v1798_v63, 4 }
 0x24a   : > { %3536 = vmatmul.mubr.bf16.gmra.mrb[4].mxu1 %v3875_v56  ;;  %v3871_v56 = vld [vmem:[#allocation11 + $0x128] sm:$0xff]   ;;  %3471 = vmatprep.subr.bf16.mxu0 %v3882_v58  ;;  %v1061_v49 = vrot.slane %v1059_v13, 5 }
 0x24b   : > { %3544 = vmatpush3.bf16.msra.mxu1 %v3865_v44  ;;  %v1762_v54 = vsel %vm4756_vm12, %v1757_v42, %v1761_v25  ;;  %v1772_v44 = vsel %vm4756_vm12, %v1767_v48, %v1771_v36  ;;  %v3877_v36 = vld [vmem:[#allocation11 + $0x138] sm:$0xff]   ;;  %v1067_v42 = vshll.u32 %v4804_v29, 16  ;;  %v1056_v48 = vor.u32 %v1055_v30, %v1051_v28 }
 0x24c   : > { %3545 = vmatprep.subr.bf16.mxu1 %v3867_v9  ;;  %v3151_v59 = vcombine.low %v1762_v54, %v1772_v44  ;;  %v4820_v54 = vld [vmem:[#allocation2 + $0x28] sm:$0xf]  ;;  %v1066_v44 = vrot.slane %v1064_v39, 4 }
 0x24d   : > { %3472 = vmatpush3.bf16.msra.mxu0 %v3882_v58  ;;  %v1069_v57 = vrot.slane %v1067_v42, 5  ;;  %v1075_v58 = vrot.slane %v1073_v43, 5  ;;  %v1811_v13 = vshrl.u32 %v4820_v54, 16  ;;  %v4832_v43 = vld [vmem:[#allocation2 + $0x38] sm:$0x1] }
 0x24e   : > { %3555 = vmatprep.mubr.bf16.mxu1 %v3151_v59  ;;  %3473 = vmatprep.subr.bf16.mxu0 %v3884_v52  ;;  %v1057_v59 = vrot.slane %v1056_v48, 4 }
 0x24f   : > { %3546 = vmatpush3.bf16.msra.mxu1 %v3867_v9  ;;  %v1040_v9 = vshrl.u32 %v4791_v1, 16  ;;  %v1070_v34 = vor.u32 %v1069_v57, %v1066_v44  ;;  %v1813_v48 = vrot.slane %v1811_v13, 4 }
 0x250   : > { %3547 = vmatprep.subr.bf16.mxu1 %v3869_v32  ;;  %v1062_v11 = vsel %vm4756_vm12, %v1057_v59, %v1061_v49  ;;  %v1817_v49 = vshll.u32 %v4824_v3, 16 }
 0x251   : > { %v1042_v25 = vrot.slane %v1040_v9, 4  ;;  %3474 = vmatpush3.bf16.msra.mxu0 %v3884_v52  ;;  %v1801_v52 = vshll.u32 %v1743_v45, 16  ;;  %v1807_v9 = vshll.u32 %v4820_v54, 16 }
 0x252   : > { %3475 = vmatprep.subr.bf16.mxu0 %v3886_v24 }
 0x253   : > { %3548 = vmatpush3.bf16.msra.mxu1 %v3869_v32  ;;  %v4810_v32 = vld [vmem:[#allocation2 + $0x2c] sm:$0x1]  ;;  %v1046_v37 = vor.u32 %v1045_v27, %v1042_v25  ;;  %v4830_v25 = vld [vmem:[#allocation2 + $0x34] sm:$0xf]  ;;  %v1803_v39 = vrot.slane %v1801_v52, 5  ;;  %v1809_v42 = vrot.slane %v1807_v9, 5 }
 0x254   : > { %3549 = vmatprep.subr.bf16.mxu1 %v3871_v56  ;;  %v1083_v51 = vshll.u32 %v4810_v32, 16  ;;  %v3881_v27 = vld [vmem:[#allocation11 + $0x148] sm:$0xff]   ;;  %v1831_v44 = vshll.u32 %v4830_v25, 16  ;;  %v3892_v52 = vld [vmem:[#allocation11 + $0x38] sm:$0xff]   ;;  %v1999_v9 = vld [vmem:[#allocation2 + $0xc] sm:$0xe] }
 0x255   : > { %3476 = vmatpush3.bf16.msra.mxu0 %v3886_v24  ;;  %v1804_v24 = vor.u32 %v1803_v39, %v1800_v12  ;;  %v1814_v59 = vor.u32 %v1813_v48, %v1809_v42  ;;  %v3883_v12 = vld [vmem:[#allocation11 + $0x150] sm:$0xff]   ;;  %v3163_v13 = vrot.slane %v1999_v9, 9  ;;  %v3885_v48 = vld [vmem:[#allocation11 + $0x158] sm:$0xff]   ;;  %v2024_v9 = vrot.slane %v4773_v8, 5 }
 0x256   : > { %v1085_v62 = vrot.slane %v1083_v51, 5  ;;  %3477 = vmatprep.subr.bf16.mxu0 %v3888_v47 }
 0x257   : > { %3550 = vmatpush3.bf16.msra.mxu1 %v3871_v56  ;;  %v1047_v56 = vrot.slane %v1046_v37, 4  ;;  %v1071_v37 = vrot.slane %v1070_v34, 4  ;;  %v2018_v18 = vsel %vm4855_vm15, %v3163_v13, %v2017_v35  ;;  %v2026_v8 = vrot.slane %v2024_v9, 4  ;;  %v3904_v13 = vld [vmem:[#allocation11 + $0xa0] sm:$0xff]  }
 0x258   : > { %3551 = vmatprep.subr.bf16.mxu1 %v3874_v2 }
 0x259   : > { %v1052_v0 = vsel %vm4756_vm12, %v1047_v56, %v1051_v28  ;;  %v3890_v28 = vld [vmem:[#allocation11 + $0x30] sm:$0xff]   ;;  %v1076_v51 = vsel %vm4756_vm12, %v1071_v37, %v1075_v58  ;;  %v1825_v56 = vshll.u32 %v1746_v10, 16  ;;  %3478 = vmatpush3.bf16.msra.mxu0 %v3888_v47  ;;  %v1815_v10 = vrot.slane %v1814_v59, 4 }
 0x25a   : > { %v3101_v30 = vcombine.low %v1052_v0, %v1062_v11  ;;  %v1805_v0 = vrot.slane %v1804_v24, 4  ;;  %3479 = vmatprep.subr.bf16.mxu0 %v3890_v28  ;;  %v1833_v11 = vrot.slane %v1831_v44, 5  ;;  %v3887_v24 = vld [vmem:[#allocation11 + $0x160] sm:$0xff]   ;;  %v3898_v44 = vld [vmem:[#allocation11 + $0x88] sm:$0xff]   ;;  %v2000_v59 = vld [vmem:[#allocation2 + $0x18] sm:$0xe] }
 0x25b   : > { %3552 = vmatpush3.bf16.msra.mxu1 %v3874_v2  ;;  %v1080_v2 = vor.u32 %v1079_v60, %v1075_v58  ;;  %v1824_v60 = vrot.slane %v1822_v50, 4  ;;  %v1827_v34 = vrot.slane %v1825_v56, 5  ;;  %v2019_v58 = vrot.slane %v2017_v35, 4  ;;  %v3895_v50 = vld [vmem:[#allocation11 + $0x80] sm:$0xff]  }
 0x25c   : > { %3553 = vmatprep.subr.bf16.mxu1 %v3877_v36  ;;  %3463 = vmatprep.mubr.bf16.mxu0 %v3101_v30  ;;  %v2020_v30 = vrot.slane %v4765_v61, 5 }
 0x25d   : > { %v1081_v45 = vrot.slane %v1080_v2, 4  ;;  %v1841_v2 = vshll.u32 %v4832_v43, 16  ;;  %v1828_v47 = vor.u32 %v1827_v34, %v1824_v60  ;;  %3480 = vmatpush3.bf16.msra.mxu0 %v3890_v28  ;;  %v1387_v60 = vrot.slane %v4737_v19, 5 }
 0x25e   : > { %3481 = vmatprep.subr.bf16.mxu0 %v3892_v52  ;;  %v3114_v34 = vcombine.low %v4804_v29, %v4808_v31  ;;  %v2031_v19 = vrot.slane %v4820_v54, 5 }
 0x25f   : > { %3554 = vmatpush3.bf16.msra.mxu1 %v3877_v36  ;;  %v1086_v57 = vsel %vm4756_vm12, %v1081_v45, %v1085_v62  ;;  %v1819_v36 = vrot.slane %v1817_v49, 5  ;;  %v1835_v62 = vshrl.u32 %v4830_v25, 16  ;;  %v1829_v45 = vrot.slane %v1828_v47, 4 }
 0x260   : > { %3563 = vmatprep.subr.bf16.mxu1 %v3879_v46  ;;  %v3102_v63 = vcombine.low %v1076_v51, %v1086_v57  ;;  %v1843_v49 = vrot.slane %v1841_v2, 5  ;;  %v3113_v57 = vcombine.low %v4791_v1, %v4793_v7  ;;  %v3891_v1 = vld [vmem:[#allocation11 + $0x170] sm:$0xff]   ;;  %v2027_v47 = vrot.slane %v4775_v23, 5 }
 0x261   : > { %v1837_v37 = vrot.slane %v1835_v62, 4  ;;  %v1834_v28 = vsel %vm4756_vm12, %v1829_v45, %v1833_v11  ;;  %3482 = vmatpush3.bf16.msra.mxu0 %v3892_v52  ;;  %v3164_v52 = vrot.slane %v2000_v59, 9  ;;  %v1371_v62 = vld [vmem:[#allocation2 + $0xc] sm:$0xe]  ;;  %v2033_v23 = vrot.slane %v2031_v19, 4 }
 0x262   : > { %3556 = vmatmul.mubr.bf16.vlgmr.msra.gmra.mrb[0].mxu1 %v4806_v26  ;;  %3464 = vmatmul.mubr.bf16.gmra.mrb[20].mxu0 %v3102_v63  ;;  %v1810_v26 = vsel %vm4756_vm12, %v1805_v0, %v1809_v42  ;;  %v1390_v63 = vrot.slane %v4739_v20, 5  ;;  %v1397_v0 = vrot.slane %v4750_v41, 5  ;;  %v1370_v20 = vld [vmem:[#allocation2] sm:$0xe]  ;;  %v1394_v41 = vrot.slane %v4748_v40, 5 }
 0x263   : > { %3564 = vmatpush3.bf16.msra.mxu1 %v3879_v46  ;;  %v1820_v46 = vsel %vm4756_vm12, %v1815_v10, %v1819_v36  ;;  %3483 = vmatprep.mubr.bf16.mxu0 %v3111_v33  ;;  %v1838_v61 = vor.u32 %v1837_v37, %v1833_v11  ;;  %v2021_v33 = vsel %vm4855_vm15, %v2019_v58, %v2020_v30  ;;  %v3889_v36 = vld [vmem:[#allocation11 + $0x168] sm:$0xff]   ;;  %v3902_v58 = vld [vmem:[#allocation11 + $0x98] sm:$0xff]   ;;  %v1389_v10 = vrot.slane %v1387_v60, 4  ;;  %v1372_v59 = vld [vmem:[#allocation2 + $0x18] sm:$0xe] }
 0x264   : > { %3565 = vmatprep.subr.bf16.mxu1 %v3881_v27  ;;  %v3153_v42 = vcombine.low %v1810_v26, %v1820_v46  ;;  %3491 = vmatprep.subr.bf16.mxu0 %v3895_v50  ;;  %v3167_v55 = vcombine.low %v2018_v18, %v2021_v33  ;;  %v2001_v11 = vld [vmem:[#allocation2 + $0x24] sm:$0xe]  ;;  %v3123_v2 = vrot.slane %v1370_v20, 9  ;;  %v1396_v26 = vrot.slane %v1394_v41, 4  ;;  %v2002_v18 = vld [vmem:[#allocation2 + $0x30] sm:$0xe] }
 0x265   : > { %v1839_v51 = vrot.slane %v1838_v61, 4  ;;  %v1391_v29 = vsel %vm4855_vm15, %v1389_v10, %v1390_v63  ;;  %v3893_v30 = vld [vmem:[#allocation11 + $0x178] sm:$0xff]   ;;  %v2034_v46 = vrot.slane %v4824_v3, 5  ;;  %v3165_v45 = vrot.slane %v2001_v11, 9  ;;  %v3906_v61 = vld [vmem:[#allocation11 + $0xa8] sm:$0xff]   ;;  %v3897_v33 = vld [vmem:[#allocation11 + $0x180] sm:$0xff]  }
 0x266   : > { %3559 = vmatprep.mubr.bf16.mxu1 %v3153_v42  ;;  %v1388_v54 = vsel %vm4855_vm15, %v3123_v2, %v1387_v60  ;;  %v4893_v42 = vsel %vm4855_vm15, %v1396_v26, %v1397_v0  ;;  %v2028_v3 = vsel %vm4855_vm15, %v2026_v8, %v2027_v47  ;;  %v3125_v60 = vrot.slane %v1372_v59, 9  ;;  %v3901_v0 = vld [vmem:[#allocation11 + $0x190] sm:$0xff]   ;;  %v3903_v11 = vld [vmem:[#allocation11 + $0x198] sm:$0xff]  }
 0x267   : > { %3566 = vmatpush3.bf16.msra.mxu1 %v3881_v27  ;;  %v3112_v27 = vcombine.low %v4746_v38, %v4748_v40  ;;  %v1844_v56 = vsel %vm4756_vm12, %v1839_v51, %v1843_v49  ;;  %v3900_v38 = vld [vmem:[#allocation11 + $0x90] sm:$0xff]   ;;  %v3127_v37 = vcombine.low %v1388_v54, %v1391_v29  ;;  %v2038_v49 = vrot.slane %v4830_v25, 5  ;;  %v3907_v29 = vld [vmem:[#allocation11 + $0x1a8] sm:$0xff]   ;;  %v3919_v59 = vld [vmem:[#allocation11 + $0x1d8] sm:$0xff]  }
 0x268   : > { %3567 = vmatprep.subr.bf16.mxu1 %v3883_v12  ;;  %v3154_v35 = vcombine.low %v1834_v28, %v1844_v56  ;;  %v2032_v28 = vsel %vm4855_vm15, %v3165_v45, %v2031_v19  ;;  %v2035_v51 = vsel %vm4855_vm15, %v2033_v23, %v2034_v46  ;;  %v2041_v25 = vrot.slane %v4832_v43, 5  ;;  %v3910_v56 = vld [vmem:[#allocation11 + $0xb0] sm:$0xff]   ;;  %v4927_v23 = vld [vmem:[#allocation2 + $0x20] sm:$0x1] }
 0x269   : > { %v1411_v20 = vrot.slane %v4810_v32, 5  ;;  %v2368_v32 = vld [vmem:[#allocation2 + $0x18] sm:$0xf]  ;;  %v4923_v8 = vld [vmem:[#allocation2 + $0x1c] sm:$0xf] }
 0x26a   : > { %3484 = vmatmul.mubr.bf16.vlgmr.msra.gmra.mrb[16].mxu0 %v3112_v27  ;;  %3560 = vmatmul.mubr.bf16.gmra.mrb[4].mxu1 %v3154_v35  ;;  %v2040_v35 = vrot.slane %v2038_v49, 4  ;;  %v3911_v26 = vld [vmem:[#allocation11 + $0x1b0] sm:$0xff]   ;;  %v2381_v47 = vshrl.u32 %v2368_v32, 16  ;;  %v2390_v54 = vshll.u32 %v4923_v8, 16 }
 0x26b   : > { %3568 = vmatpush3.bf16.msra.mxu1 %v3883_v12  ;;  %3492 = vmatpush3.bf16.msra.mxu0 %v3895_v50  ;;  %v3124_v12 = vrot.slane %v1371_v62, 9  ;;  %v2025_v50 = vsel %vm4855_vm15, %v3164_v52, %v2024_v9  ;;  %v1373_v52 = vld [vmem:[#allocation2 + $0x24] sm:$0xe]  ;;  %v3914_v9 = vld [vmem:[#allocation2 + $0x18] sm:$0xff]   ;;  %v3905_v62 = vld [vmem:[#allocation11 + $0x1a0] sm:$0xff]  }
 0x26c   : > { %3569 = vmatprep.subr.bf16.mxu1 %v3885_v48  ;;  %3579 = vmatprep.mubr.bf16.mxu1 %v3167_v55  ;;  %v3168_v27 = vcombine.low %v2025_v50, %v2028_v3  ;;  %v3166_v55 = vrot.slane %v2002_v18, 9  ;;  %v2383_v46 = vrot.slane %v2381_v47, 4  ;;  %v2400_v50 = vshll.u32 %v4927_v23, 16  ;;  %v3916_v3 = vld [vmem:[#allocation2 + $0x24] sm:$0xff]   ;;  %v3922_v18 = vld [vmem:[#allocation2 + $0x30] sm:$0xff]  }
 0x26d   : > { %3493 = vmatprep.subr.bf16.mxu0 %v3898_v44  ;;  %3487 = vmatprep.mubr.bf16.mxu0 %v3113_v57  ;;  %v4888_v40 = vsel %vm4855_vm15, %v3124_v12, %v1394_v41  ;;  %v3169_v57 = vcombine.low %v2032_v28, %v2035_v51 }
 0x26e   : > { %v2039_v43 = vsel %vm4855_vm15, %v3166_v55, %v2038_v49  ;;  %v3924_v55 = vld [vmem:[#allocation2 + $0x3c] sm:$0xff]  }
 0x26f   : > { %3570 = vmatpush3.bf16.msra.mxu1 %v3885_v48  ;;  %3494 = vmatpush3.bf16.msra.mxu0 %v3898_v44  ;;  %v3128_v48 = vcombine.low %v4888_v40, %v4893_v42  ;;  %v1401_v44 = vrot.slane %v4793_v7, 5  ;;  %v1404_v7 = vrot.slane %v4797_v6, 5  ;;  %v3126_v6 = vrot.slane %v1373_v52, 9 }
 0x270   : > { %3571 = vmatprep.subr.bf16.mxu1 %v3887_v24  ;;  %3495 = vmatprep.subr.bf16.mxu0 %v3900_v38  ;;  %v2394_v40 = vshrl.u32 %v4923_v8, 16  ;;  %v2392_v42 = vrot.slane %v2390_v54, 5 }
 0x271   : > { %v1403_v63 = vrot.slane %v1401_v44, 4 }
 0x272   : > { %3488 = vmatmul.mubr.bf16.gmra.mrb[20].mxu0 %v3114_v34  ;;  %v1408_v34 = vrot.slane %v4808_v31, 5  ;;  %v2396_v45 = vrot.slane %v2394_v40, 4 }
 0x273   : > { %3572 = vmatpush3.bf16.msra.mxu1 %v3887_v24  ;;  %3496 = vmatpush3.bf16.msra.mxu0 %v3900_v38  ;;  %v3899_v24 = vld [vmem:[#allocation11 + $0x188] sm:$0xff]   ;;  %v2042_v38 = vsel %vm4855_vm15, %v2040_v35, %v2041_v25  ;;  %v1405_v10 = vsel %vm4855_vm15, %v1403_v63, %v1404_v7  ;;  %v2402_v25 = vrot.slane %v2400_v50, 5 }
 0x274   : > { %3573 = vmatprep.subr.bf16.mxu1 %v3889_v36  ;;  %3497 = vmatprep.subr.bf16.mxu0 %v3902_v58  ;;  %v1410_v19 = vrot.slane %v1408_v34, 4  ;;  %v1409_v41 = vsel %vm4855_vm15, %v3126_v6, %v1408_v34  ;;  %v2397_v49 = vor.u32 %v2396_v45, %v2392_v42 }
 0x275   : > { %3507 = vmatprep.mubr.bf16.mxu0 %v3127_v37 }
 0x276   : > { %v1412_v2 = vsel %vm4855_vm15, %v1410_v19, %v1411_v20  ;;  %v2398_v51 = vrot.slane %v2397_v49, 4  ;;  %v3921_v19 = vld [vmem:[#allocation11 + $0x1e8] sm:$0xff]   ;;  %v4942_v20 = vld [vmem:[#allocation2 + $0x2c] sm:$0x1] }
 0x277   : > { %3574 = vmatpush3.bf16.msra.mxu1 %v3889_v36  ;;  %3498 = vmatpush3.bf16.msra.mxu0 %v3902_v58  ;;  %v3912_v36 = vld [vmem:[#allocation11 + $0xb8] sm:$0xff]   ;;  %v1402_v58 = vsel %vm4855_vm15, %v3125_v60, %v1401_v44  ;;  %v3130_v12 = vcombine.low %v1409_v41, %v1412_v2 }
 0x278   : > { %3575 = vmatprep.subr.bf16.mxu1 %v3891_v1  ;;  %3499 = vmatprep.subr.bf16.mxu0 %v3904_v13  ;;  %v3129_v31 = vcombine.low %v1402_v58, %v1405_v10  ;;  %v2371_v44 = vld [vmem:[#allocation2 + $0x24] sm:$0xf] }
 0x279   : > { %v2408_v60 = vshll.u32 %v2371_v44, 16 }
 0x27b   : > { %3576 = vmatpush3.bf16.msra.mxu1 %v3891_v1  ;;  %3500 = vmatpush3.bf16.msra.mxu0 %v3904_v13  ;;  %v3170_v1 = vcombine.low %v2039_v43, %v2042_v38  ;;  %v2384_v13 = vshll.u32 %v2368_v32, 16  ;;  %v2374_v38 = vld [vmem:[#allocation2 + $0x30] sm:$0xf]  ;;  %v4936_v43 = vld [vmem:[#allocation2 + $0x34] sm:$0xf]  ;;  %v2410_v10 = vrot.slane %v2408_v60, 5 }
 0x27c   : > { %3577 = vmatprep.subr.bf16.mxu1 %v3893_v30  ;;  %3501 = vmatprep.subr.bf16.mxu0 %v3906_v61  ;;  %v2429_v34 = vshrl.u32 %v2374_v38, 16  ;;  %v2438_v52 = vshll.u32 %v4936_v43, 16  ;;  %v4946_v32 = vld [vmem:[#allocation2 + $0x38] sm:$0x1] }
 0x27d   : > { %v2386_v37 = vrot.slane %v2384_v13, 5  ;;  %v2424_v13 = vshll.u32 %v4942_v20, 16 }
 0x27e   : > { %v2440_v2 = vrot.slane %v2438_v52, 5 }
 0x27f   : > { %3578 = vmatpush3.bf16.msra.mxu1 %v3893_v30  ;;  %3502 = vmatpush3.bf16.msra.mxu0 %v3906_v61  ;;  %v3913_v30 = vld [vmem:[#allocation11 + $0x1b8] sm:$0xff]   ;;  %v2387_v61 = vor.u32 %v2386_v37, %v2383_v46  ;;  %v3923_v37 = vld [vmem:[#allocation11 + $0x1f0] sm:$0xff]   ;;  %v2426_v50 = vrot.slane %v2424_v13, 5 }
 0x280   : > { %3587 = vmatprep.subr.bf16.mxu1 %v3897_v33  ;;  %3503 = vmatprep.subr.bf16.mxu0 %v3910_v56 }
 0x281   : > { %v2388_v28 = vrot.slane %v2387_v61, 4 }
 0x282   : > { %3580 = vmatmul.mubr.bf16.vlgmr.msra.gmra.mrb[0].mxu1 %v3168_v27  ;;  %v3918_v27 = vld [vmem:[#allocation11 + $0x1d0] sm:$0xff]  }
 0x283   : > { %3588 = vmatpush3.bf16.msra.mxu1 %v3897_v33  ;;  %3583 = vmatprep.mubr.bf16.mxu1 %v3169_v57  ;;  %v3917_v33 = vld [vmem:[#allocation11 + $0x1c8] sm:$0xff]   ;;  %v4934_v57 = vld [vmem:[#allocation2 + $0x28] sm:$0xf] }
 0x284   : > { %3589 = vmatprep.subr.bf16.mxu1 %v3899_v24  ;;  %3504 = vmatpush3.bf16.msra.mxu0 %v3910_v56  ;;  %v2403_v56 = vsel %vm4756_vm12, %v2398_v51, %v2402_v25  ;;  %v2414_v63 = vshll.u32 %v4934_v57, 16  ;;  %v2418_v7 = vshrl.u32 %v4934_v57, 16  ;;  %v3925_v51 = vld [vmem:[#allocation11 + $0x1f8] sm:$0xff]   ;;  %v2655_v13 = vrot.slane %v4934_v57, 5 }
 0x285   : > { %3505 = vmatprep.subr.bf16.mxu0 %v3912_v36 }
 0x286   : > { %v2420_v6 = vrot.slane %v2418_v7, 4  ;;  %v2648_v7 = vrot.slane %v4923_v8, 5 }
 0x287   : > { %3590 = vmatpush3.bf16.msra.mxu1 %v3899_v24  ;;  %v2393_v24 = vsel %vm4756_vm12, %v2388_v28, %v2392_v42 }
 0x288   : > { %3591 = vmatprep.subr.bf16.mxu1 %v3901_v0  ;;  %3506 = vmatpush3.bf16.msra.mxu0 %v3912_v36  ;;  %v3191_v35 = vcombine.low %v2393_v24, %v2403_v56  ;;  %v2405_v36 = vshrl.u32 %v2371_v44, 16  ;;  %v4952_v56 = vld [vmem:[#allocation2 + $0x44] sm:$0x1] }
 0x28a   : > { %3584 = vmatmul.mubr.bf16.gmra.mrb[4].mxu1 %v3170_v1  ;;  %v2432_v1 = vshll.u32 %v2374_v38, 16  ;;  %v2407_v58 = vrot.slane %v2405_v36, 4  ;;  %v2472_v38 = vshll.u32 %v4952_v56, 16  ;;  %v3926_v36 = vld [vmem:[#allocation11 + $0x200] sm:$0xff]  }
 0x28b   : > { %3592 = vmatpush3.bf16.msra.mxu1 %v3901_v0  ;;  %3603 = vmatprep.mubr.bf16.mxu1 %v3914_v9  ;;  %v3920_v0 = vld [vmem:[#allocation11 + $0x1e0] sm:$0xff]   ;;  %v2442_v9 = vshrl.u32 %v4936_v43, 16 }
 0x28c   : > { %3593 = vmatprep.subr.bf16.mxu1 %v3903_v11  ;;  %3508 = vmatmul.mubr.bf16.vlgmr.msra.gmra.mrb[16].mxu0 %v3128_v48  ;;  %v3915_v48 = vld [vmem:[#allocation11 + $0x1c0] sm:$0xff]   ;;  %v2434_v41 = vrot.slane %v2432_v1, 5 }
 0x28d   : > { %3511 = vmatprep.mubr.bf16.mxu0 %v3129_v31  ;;  %v2377_v31 = vld [vmem:[#allocation2 + $0x3c] sm:$0xf] }
 0x28e   : > { %v2453_v54 = vshrl.u32 %v2377_v31, 16  ;;  %v2456_v40 = vshll.u32 %v2377_v31, 16 }
 0x28f   : > { %3594 = vmatpush3.bf16.msra.mxu1 %v3903_v11  ;;  %v2416_v11 = vrot.slane %v2414_v63, 5 }
 0x290   : > { %3595 = vmatprep.subr.bf16.mxu1 %v3905_v62 }
 0x291   : > { %v2421_v47 = vor.u32 %v2420_v6, %v2416_v11  ;;  %v2650_v6 = vrot.slane %v2648_v7, 4 }
 0x293   : > { %3596 = vmatpush3.bf16.msra.mxu1 %v3905_v62  ;;  %v2431_v62 = vrot.slane %v2429_v34, 4  ;;  %v2422_v49 = vrot.slane %v2421_v47, 4  ;;  %v3930_v47 = vld [vmem:[#allocation11 + $0x220] sm:$0xff]  }
 0x294   : > { %3597 = vmatprep.subr.bf16.mxu1 %v3907_v29  ;;  %3512 = vmatmul.mubr.bf16.gmra.mrb[20].mxu0 %v3130_v12  ;;  %v4944_v12 = vld [vmem:[#allocation2 + $0x40] sm:$0xf] }
 0x295   : > { %v2466_v46 = vshrl.u32 %v4944_v12, 16  ;;  %v2435_v42 = vor.u32 %v2434_v41, %v2431_v62  ;;  %v3928_v62 = vld [vmem:[#allocation11 + $0x210] sm:$0xff]  }
 0x297   : > { %3598 = vmatpush3.bf16.msra.mxu1 %v3907_v29  ;;  %v2444_v29 = vrot.slane %v2442_v9, 4  ;;  %v2468_v28 = vrot.slane %v2466_v46, 4  ;;  %v2436_v25 = vrot.slane %v2435_v42, 4  ;;  %v2632_v46 = vld [vmem:[#allocation2 + $0x30] sm:$0xe]  ;;  %v2657_v42 = vrot.slane %v2655_v13, 4 }
 0x298   : > { %3599 = vmatprep.subr.bf16.mxu1 %v3911_v26 }
 0x299   : > { %v2445_v45 = vor.u32 %v2444_v29, %v2440_v2  ;;  %v2441_v60 = vsel %vm4756_vm12, %v2436_v25, %v2440_v2 }
 0x29b   : > { %3600 = vmatpush3.bf16.msra.mxu1 %v3911_v26  ;;  %v2411_v26 = vor.u32 %v2410_v10, %v2407_v58  ;;  %v2474_v58 = vrot.slane %v2472_v38, 5  ;;  %v3927_v10 = vld [vmem:[#allocation11 + $0x208] sm:$0xff]  }
 0x29c   : > { %3601 = vmatprep.subr.bf16.mxu1 %v3913_v30 }
 0x29d   : > { %v2412_v61 = vrot.slane %v2411_v26, 4  ;;  %v3929_v26 = vld [vmem:[#allocation11 + $0x218] sm:$0xff]  }
 0x29f   : > { %3602 = vmatpush3.bf16.msra.mxu1 %v3913_v30  ;;  %v2462_v30 = vshll.u32 %v4944_v12, 16 }
 0x2a0   : > { %3611 = vmatprep.subr.bf16.mxu1 %v3915_v48 }
 0x2a2   : > { %3604 = vmatmul.mubr.bf16.vlgmr.msra.gmra.mrb[0].mxu1 %v3916_v3  ;;  %v2455_v3 = vrot.slane %v2453_v54, 4  ;;  %v3932_v54 = vld [vmem:[#allocation11 + $0x230] sm:$0xff]  }
 0x2a3   : > { %3612 = vmatpush3.bf16.msra.mxu1 %v3915_v48  ;;  %3607 = vmatprep.mubr.bf16.mxu1 %v3922_v18  ;;  %v2448_v48 = vshll.u32 %v4946_v32, 16  ;;  %v2458_v18 = vrot.slane %v2456_v40, 5  ;;  %v2631_v40 = vld [vmem:[#allocation2 + $0x24] sm:$0xe] }
 0x2a4   : > { %3613 = vmatprep.subr.bf16.mxu1 %v3917_v33 }
 0x2a5   : > { %v2450_v24 = vrot.slane %v2448_v48, 5  ;;  %v2459_v44 = vor.u32 %v2458_v18, %v2455_v3  ;;  %v3933_v48 = vld [vmem:[#allocation11 + $0x238] sm:$0xff]  }
 0x2a7   : > { %3614 = vmatpush3.bf16.msra.mxu1 %v3917_v33  ;;  %v2464_v33 = vrot.slane %v2462_v30, 5  ;;  %v2460_v52 = vrot.slane %v2459_v44, 4  ;;  %v2662_v30 = vrot.slane %v4936_v43, 5  ;;  %v2669_v43 = vrot.slane %v4944_v12, 5 }
 0x2a8   : > { %3615 = vmatprep.subr.bf16.mxu1 %v3918_v27 }
 0x2a9   : > { %v2465_v31 = vsel %vm4756_vm12, %v2460_v52, %v2464_v33  ;;  %v2671_v25 = vrot.slane %v2669_v43, 4 }
 0x2aa   : > { %3608 = vmatmul.mubr.bf16.gmra.mrb[4].mxu1 %v3924_v55  ;;  %v2417_v55 = vsel %vm4756_vm12, %v2412_v61, %v2416_v11  ;;  %v3205_v61 = vrot.slane %v2632_v46, 9 }
 0x2ab   : > { %3616 = vmatpush3.bf16.msra.mxu1 %v3918_v27  ;;  %3627 = vmatprep.mubr.bf16.mxu1 %v3191_v35  ;;  %v2446_v27 = vrot.slane %v2445_v45, 4  ;;  %v2427_v35 = vsel %vm4756_vm12, %v2422_v49, %v2426_v50  ;;  %v2658_v45 = vrot.slane %v4942_v20, 5  ;;  %v2664_v49 = vrot.slane %v2662_v30, 4 }
 0x2ac   : > { %3617 = vmatprep.subr.bf16.mxu1 %v3919_v59  ;;  %v3192_v34 = vcombine.low %v2417_v55, %v2427_v35  ;;  %v2665_v50 = vrot.slane %v4946_v32, 5  ;;  %v2663_v18 = vsel %vm4855_vm15, %v3205_v61, %v2662_v30 }
 0x2ad   : > { %v2451_v63 = vsel %vm4756_vm12, %v2446_v27, %v2450_v24  ;;  %v2659_v3 = vsel %vm4855_vm15, %v2657_v42, %v2658_v45  ;;  %v2672_v27 = vrot.slane %v4952_v56, 5  ;;  %v3219_v56 = vld [vmem:[%s5160_s26] ss:$0 sm:$0xff] }
 0x2ae   : > { %v3193_v1 = vcombine.low %v2441_v60, %v2451_v63  ;;  %v2666_v20 = vsel %vm4855_vm15, %v2664_v49, %v2665_v50 }
 0x2af   : > { %3618 = vmatpush3.bf16.msra.mxu1 %v3919_v59  ;;  %v2469_v59 = vor.u32 %v2468_v28, %v2464_v33  ;;  %v2633_v33 = vld [vmem:[#allocation2 + $0x3c] sm:$0xe]  ;;  %v3209_v32 = vcombine.low %v2663_v18, %v2666_v20  ;;  %v2673_v24 = vsel %vm4855_vm15, %v2671_v25, %v2672_v27 }
 0x2b0   : > { %3619 = vmatprep.subr.bf16.mxu1 %v3920_v0 }
 0x2b1   : > { %v2470_v9 = vrot.slane %v2469_v59, 4 }
 0x2b3   : > { %3620 = vmatpush3.bf16.msra.mxu1 %v3920_v0  ;;  %v2630_v0 = vld [vmem:[#allocation2 + $0x18] sm:$0xe]  ;;  %v2475_v8 = vsel %vm4756_vm12, %v2470_v9, %v2474_v58 }
 0x2b4   : > { %3621 = vmatprep.subr.bf16.mxu1 %v3921_v19  ;;  %v3203_v11 = vrot.slane %v2630_v0, 9  ;;  %v3194_v29 = vcombine.low %v2465_v31, %v2475_v8 }
 0x2b6   : > { %v2649_v41 = vsel %vm4855_vm15, %v3203_v11, %v2648_v7 }
 0x2b7   : > { %3622 = vmatpush3.bf16.msra.mxu1 %v3921_v19  ;;  %v2651_v19 = vrot.slane %v4927_v23, 5 }
 0x2b8   : > { %3623 = vmatprep.subr.bf16.mxu1 %v3923_v37 }
 0x2b9   : > { %v2652_v2 = vsel %vm4855_vm15, %v2650_v6, %v2651_v19 }
 0x2ba   : > { %v3207_v23 = vcombine.low %v2649_v41, %v2652_v2 }
 0x2bb   : > { %3624 = vmatpush3.bf16.msra.mxu1 %v3923_v37  ;;  %v3204_v37 = vrot.slane %v2631_v40, 9 }
 0x2bc   : > { %3625 = vmatprep.subr.bf16.mxu1 %v3925_v51 }
 0x2bd   : > { %v2656_v57 = vsel %vm4855_vm15, %v3204_v37, %v2655_v13 }
 0x2be   : > { %v3208_v28 = vcombine.low %v2656_v57, %v2659_v3 }
 0x2bf   : > { %3626 = vmatpush3.bf16.msra.mxu1 %v3925_v51  ;;  %v3206_v51 = vrot.slane %v2633_v33, 9 }
 0x2c0   : > { %3635 = vmatprep.subr.bf16.mxu1 %v3926_v36 }
 0x2c1   : > { %v2670_v12 = vsel %vm4855_vm15, %v3206_v51, %v2669_v43 }
 0x2c2   : > { %3628 = vmatmul.mubr.bf16.vlgmr.msra.gmra.mrb[0].mxu1 %v3192_v34  ;;  %v3210_v55 = vcombine.low %v2670_v12, %v2673_v24 }
 0x2c3   : > { %3636 = vmatpush3.bf16.msra.mxu1 %v3926_v36  ;;  %3631 = vmatprep.mubr.bf16.mxu1 %v3193_v1 }
 0x2c4   : > { %3637 = vmatprep.subr.bf16.mxu1 %v3927_v10 }
 0x2c7   : > { %3638 = vmatpush3.bf16.msra.mxu1 %v3927_v10 }
 0x2c8   : > { %3639 = vmatprep.subr.bf16.mxu1 %v3928_v62 }
 0x2ca   : > { %3632 = vmatmul.mubr.bf16.gmra.mrb[4].mxu1 %v3194_v29 }
 0x2cb   : > { %3640 = vmatpush3.bf16.msra.mxu1 %v3928_v62  ;;  %3651 = vmatprep.mubr.bf16.mxu1 %v3207_v23 }
 0x2cc   : > { %3641 = vmatprep.subr.bf16.mxu1 %v3929_v26 }
 0x2cf   : > { %3642 = vmatpush3.bf16.msra.mxu1 %v3929_v26 }
 0x2d0   : > { %3643 = vmatprep.subr.bf16.mxu1 %v3930_v47 }
 0x2d3   : > { %3644 = vmatpush3.bf16.msra.mxu1 %v3930_v47 }
 0x2d4   : > { %3645 = vmatprep.subr.bf16.mxu1 %v3931_v53 }
 0x2d7   : > { %3646 = vmatpush3.bf16.msra.mxu1 %v3931_v53 }
 0x2d8   : > { %3647 = vmatprep.subr.bf16.mxu1 %v3932_v54 }
 0x2db   : > { %3648 = vmatpush3.bf16.msra.mxu1 %v3932_v54 }
 0x2dc   : > { %3649 = vmatprep.subr.bf16.mxu1 %v3933_v48 }
 0x2df   : > { %3650 = vmatpush3.bf16.msra.mxu1 %v3933_v48 }
 0x2e2   : > { %3652 = vmatmul.mubr.bf16.vlgmr.msra.gmra.mrb[0].mxu1 %v3208_v28 }
 0x2e3   : > { %3655 = vmatprep.mubr.bf16.mxu1 %v3209_v32 }
 0x2ea   : > { %3656 = vmatmul.mubr.bf16.gmra.mrb[4].mxu1 %v3210_v55 }
 0x35f   : > { %v3509_v35 = vpop.f32.mrb[16].mxu0 }
 0x360   : > { %v1528_v44 = vpop.f32.mrb[17].mxu0 }
 0x361   : > { %v3510_v59 = vpop.f32.mrb[18].mxu0 }
 0x362   : > { %v1531_v38 = vpop.f32.mrb[19].mxu0 }
 0x367   : > { %v3513_v36 = vpop.f32.mrb[20].mxu0 }
 0x368   : > { %v1544_v60 = vpop.f32.mrb[21].mxu0 }
 0x369   : > { %v3514_v63 = vpop.f32.mrb[22].mxu0 }
 0x36a   : > { %v1547_v7 = vpop.f32.mrb[23].mxu0 }
 0x3b5   : > { %v3653_v0 = vpop.f32.mrb[0].mxu1 }
 0x3b6   : > { %v3659_v34 = vadd.f32 %v3653_v0, %v3509_v35  ;;  %v2789_v1 = vpop.f32.mrb[1].mxu1 }
 0x3b7   : > { %v3660_v52 = vadd.f32 %v2789_v1, %v1528_v44  ;;  %v3654_v39 = vpop.f32.mrb[2].mxu1 }
 0x3b8   : > { %v2837_v9 = vadd.f32 %v3659_v34, %v3219_v56  ;;  %v3661_v58 = vadd.f32 %v3654_v39, %v3510_v59  ;;  %v2792_v10 = vpop.f32.mrb[3].mxu1 }
 0x3b9   : > { %v2835_v11 = vadd.f32 %v3660_v52, %v3219_v56  ;;  %v3662_v6 = vadd.f32 %v2792_v10, %v1531_v38 }
 0x3ba   : > { %v2845_v19 = vmul.f32 0.1, %v2837_v9  ;;  %v2838_v31 = vadd.f32 %v3661_v58, %v3219_v56 }
 0x3bb   : > { %v2843_v8 = vmul.f32 0.1, %v2835_v11  ;;  %v2836_v62 = vadd.f32 %v3662_v6, %v3219_v56 }
 0x3bc   : > { %v2853_v41 = vmax.f32 %v2837_v9, %v2845_v19  ;;  %v2846_v2 = vmul.f32 0.1, %v2838_v31 }
 0x3bd   : > { %v2851_v29 = vmax.f32 %v2835_v11, %v2843_v8  ;;  %v2844_v23 = vmul.f32 0.1, %v2836_v62  ;;  %v3657_v26 = vpop.f32.mrb[4].mxu1 }
 0x3be   : > { %v2861_v47 = vadd.f32 %v2853_v41, %v4591_v14  ;;  %v2854_v53 = vmax.f32 %v2838_v31, %v2846_v2  ;;  %v3663_v13 = vadd.f32 %v3657_v26, %v3513_v36  ;;  %v2805_v54 = vpop.f32.mrb[5].mxu1 }
 0x3bf   : > { %v2859_v40 = vadd.f32 %v2851_v29, %v4572_v4  ;;  %v2852_v30 = vmax.f32 %v2836_v62, %v2844_v23  ;;  %v3664_v46 = vadd.f32 %v2805_v54, %v1544_v60  ;;  %v3658_v37 = vpop.f32.mrb[6].mxu1 }
 0x3c0   : > { %2869 = vst [vmem:[%s4723_s3 + $0x10] sm:$0xff] %v2861_v47  ;;  %v2862_v42 = vadd.f32 %v2854_v53, %v4594_v15  ;;  %v2841_v45 = vadd.f32 %v3663_v13, %v3219_v56  ;;  %v3665_v48 = vadd.f32 %v3658_v37, %v3514_v63  ;;  %v2808_v61 = vpop.f32.mrb[7].mxu1 }
 0x3c1   : > { %2867 = vst [vmem:[%s4723_s3] sm:$0xff] %v2859_v40  ;;  %v2860_v14 = vadd.f32 %v2852_v30, %v4575_v5  ;;  %v2839_v49 = vadd.f32 %v3664_v46, %v3219_v56  ;;  %v3666_v50 = vadd.f32 %v2808_v61, %v1547_v7 }
 0x3c2   : > { %2870 = vst [vmem:[%s4723_s3 + $0x18] sm:$0xff] %v2862_v42  ;;  %v2849_v4 = vmul.f32 0.1, %v2841_v45  ;;  %v2842_v57 = vadd.f32 %v3665_v48, %v3219_v56 }
 0x3c3   : > { %2868 = vst [vmem:[%s4723_s3 + $0x8] sm:$0xff] %v2860_v14  ;;  %v2847_v3 = vmul.f32 0.1, %v2839_v49  ;;  %v2840_v43 = vadd.f32 %v3666_v50, %v3219_v56 }
 0x3c4   : > { %v2857_v18 = vmax.f32 %v2841_v45, %v2849_v4  ;;  %v2850_v15 = vmul.f32 0.1, %v2842_v57 }
 0x3c5   : > { %v2855_v20 = vmax.f32 %v2839_v49, %v2847_v3  ;;  %v2848_v33 = vmul.f32 0.1, %v2840_v43 }
 0x3c6   : > { %v2865_v5 = vadd.f32 %v2857_v18, %v4608_v21  ;;  %v2858_v28 = vmax.f32 %v2842_v57, %v2850_v15 }
 0x3c7   : > { %v2863_v32 = vadd.f32 %v2855_v20, %v4597_v16  ;;  %v2856_v51 = vmax.f32 %v2840_v43, %v2848_v33 }
 0x3c8   : > { %2873 = vst [vmem:[%s4723_s3 + $0x30] sm:$0xff] %v2865_v5  ;;  %v2866_v25 = vadd.f32 %v2858_v28, %v4611_v22 }
 0x3c9   : > { %2871 = vst [vmem:[%s4723_s3 + $0x20] sm:$0xff] %v2863_v32  ;;  %v2864_v21 = vadd.f32 %v2856_v51, %v4600_v17 }
 0x3ca   : > { %2874 = vst [vmem:[%s4723_s3 + $0x38] sm:$0xff] %v2866_v25 }
 0x3cb   : > { %2872 = vst [vmem:[%s4723_s3 + $0x28] sm:$0xff] %v2864_v21 }
 0x3cc   : > { %4093 = shalt.err (!%p4090_p1)
}
 0x3cd   : > { %s4094_s20 = scalar_lea.hbm %s5012_s24, 1024  ;;  %s4098_s8 = scalar_lea.hbm %s5164_s16, 8192 }
 0x3ce   : > { %p4095_p4 = scmp.ne.s32.totalorder %s5012_s24, %s4094_s20  ;;  %p4099_p6 = scmp.lt.u32.totalorder %s5012_s24, %s5164_s16 }
 0x3cf   : > { %p4100_p11 = scmp.lt.u32.totalorder %s4098_s8, %s4094_s20  ;;  %p4102_p0 = scmp.lt.u32.totalorder %s4094_s20, %s5012_s24 }
 0x3d0   : > { %p4096_p9 = pnand %p4095_p4, %p5165_p8 }
 0x3d1   : > { %p4101_p13 = por %p4100_p11, %p4099_p6 }
 0x3d2   : > { %p4097_p10 = pneg %p4096_p9 }
 0x3d3   : > { %p4103_p2 = por %p4102_p0, %p4101_p13 }
 0x3d5   : > { %p4104_p3 = pnand %p4103_p2, %p4097_p10 }
 0x3d7   : > { %4107 = shalt.err (!%p4104_p3)
}
 0x3d8   : > { %s4202_s26 = smov 128   ;;  %s4203_s27 = smov 8  }
 0x3d9   : > { %3737 = dma.vmem_to_hbm [thread:$0]  (%p5165_p8), %s5014_s23, 1024, %s5012_s24, %s2876_s15, %s4202_s26, %s4202_s26, %s4203_s27  }
 0x3da PF: > { %s5166_s9 = sld [smem:[#allocation21_spill]]  ;;  %s5167_s22 = sld [smem:[#allocation17_spill]] }
 0x3db   : > { %s5168_s21 = sld [smem:[#allocation24_spill]] }
 0x3e0   : > { %p3765_p5 = scmp.ge.s32.totalorder %s5166_s9, 2  ;;  %s2907_s1 = sand.u32 1, %s5167_s22  }
 0x3e1   : > { %p5169_p7 = scmp.ne.s32.totalorder %s5168_s21, 0  ;;  %s2908_s28 = scalar_lea.sflag [#allocation5], %s2907_s1 }
 0x3e3   : > { %p3757_p12 = pnand %p3765_p5, %p5169_p7 }
 0x3e5   : > { %4153 = dma.done.wait (!%p3757_p12), %s2908_s28, 1024  }
 0x3e6   : > { %4155 = vsyncadd (!%p3757_p12), %s2908_s28, 4294966272  ;;  %s27_s8 = sadd.s32 1, %s5166_s9   ;;  %s5170_s10 = sld [smem:[#allocation18_spill]] }
 0x3e7   : > { %p24_p1 = scmp.ge.s32.totalorder %s27_s8, 10   ;;  %s5171_s26 = sld [smem:[#allocation27_spill]] }
 0x3e8   : > { %s5172_s14 = sld [smem:[#allocation25_spill]]  ;;  %s5173_s23 = sld [smem:[#allocation26_spill]] }
 0x3e9   : > { %s5174_s24 = smov %s4162_s25  ;;  %s5176_s27 = smov %s4178_s29 }
 0x3ea   : > { %s5177_s28 = smov %s4182_s30  ;;  %26 = sbr.rel (!%p24_p1) target bundleno = 16 (0x10), region = 144 }
 0x3ec   : > { %s5175_s25 = smov %s5170_s10 }
 0x3ee   : > { %s5178_s29 = smov %s5172_s14  ;;  %s5179_s30 = smov %s5173_s23 }
 0x3f1   :  { %2913 = vsyncpa [#allocation4], 1 }
 0x3f2   :  { %2915 = vsyncpa [#allocation4 + $0x1], 1 }
 0x3f3   :  { %2916 = vsyncpa [#allocation7], 1 }
 0x3f4   :  { %2918 = vsyncpa [#allocation7 + $0x1], 1 }
 0x3f5   :  { %2919 = vsyncpa [#allocation10], 1 }
 0x3f6   :  { %2920 = vsyncpa [#allocation5], 1 }
 0x3f7   :  { %2922 = vsyncpa [#allocation5 + $0x1], 1 }

</bundles_post_ra>
